<compile_context>
chip_gen: v7x
topology: tpu7x:2x2x1
jax: 0.10.0
libtpu: 0.0.40
codegen_flags: <defaults>
</compile_context>

<pallas_src>
import functools

import jax
import jax.numpy as jnp
import numpy as np
from jax.experimental import pallas as pl
from jax.experimental.pallas import tpu as pltpu

BN_EPS = 1e-5
LANE = 128

# Buffer budget used to size m_tile (double-buffered pipeline buffers) and the
# scoped-VMEM limit requested from Mosaic.  50 MiB fits v7x's 64 MiB physical
# VMEM and is well above v5e's 16 MiB / v6e's 32 MiB default scoped limits.
VMEM_TILE_BUDGET = 40 * 1024 * 1024
VMEM_LIMIT_BYTES = 50 * 1024 * 1024


def _round_up(x, m):
    return (x + m - 1) // m * m


def _choose_m_tile(m, k, cout_pad, out_bytes, budget=VMEM_TILE_BUDGET):
    """Largest M-tile whose (double-buffered) pipeline buffers fit `budget`.

    Pass A buffers: xcol in (bf16) + packed weight (bf16) + conv out (bf16)
                    + stats out (8 f32 rows).
    Pass B buffers: conv in (bf16) + scale/shift (f32) + activation out.
    # TODO(synk): pipeline_mode=pl.Buffered(1) on the constant-index operands
    # (weight / scale / shift) would drop their dead second buffer and let the
    # tile grow one notch on v7x's 64 MiB VMEM; omitted for portability.
    """
    fixed = 2 * k * cout_pad * 2 + 2 * 8 * cout_pad * 4 + 4 * cout_pad * 4
    per_row_a = 2 * (k * 2 + cout_pad * 2)
    per_row_b = 2 * (cout_pad * 2 + cout_pad * out_bytes)
    per_row = max(per_row_a, per_row_b)
    rows = max(256, (budget - fixed) // per_row)   # floor keeps deep layers functional
    m_tile = int(min(2048, rows))                  # >=512 reaches ~85% of HBM roofline
    m_tile = min(m_tile, _round_up(m, 16))         # never larger than the problem
    return max(16, _round_up(m_tile, 16))


# ----------------------------------------------------------------------------
# Pallas kernels
# ----------------------------------------------------------------------------
def _conv_stats_kernel(xcol_ref, w_ref, conv_ref, stats_ref):
    """Pass A: one bf16 MXU matmul per M-tile.

    Emits (a) the conv tile in bf16 (consumed by pass B, so the im2col slab is
    read exactly once and the matmul is never recomputed) and (b) per-tile
    per-channel sum / sum-of-squares partials in rows 0/1 of an 8-row f32
    block (rows 2-7 are zero padding so the store stays (8,128)-aligned)."""
    acc = jnp.dot(xcol_ref[...], w_ref[...],
                  preferred_element_type=jnp.float32)     # (m_tile, Cout_pad) f32
    conv_ref[...] = acc.astype(conv_ref.dtype)
    s = jnp.sum(acc, axis=0, keepdims=True)
    sq = jnp.sum(acc * acc, axis=0, keepdims=True)
    stats_ref[...] = jnp.concatenate(
        [s, sq, jnp.zeros((6,) + s.shape[1:], jnp.float32)], axis=0)


def _bn_relu_kernel(conv_ref, scale_ref, shift_ref, out_ref):
    """Pass B: elementwise fused BN scale/shift + ReLU on the saved conv tile."""
    acc = conv_ref[...].astype(jnp.float32)
    out_ref[...] = jnp.maximum(acc * scale_ref[...] + shift_ref[...],
                               0.0).astype(out_ref.dtype)


# ----------------------------------------------------------------------------
# JAX-side glue: packed im2col, weight packing, per-layer wrapper
# ----------------------------------------------------------------------------
def _im2col_packed(x_nhwc):
    """(N,H,W,C) -> (N*H*W, 9*C), tap-major then channel (K = (dy*3+dx)*C + c)."""
    n, h, w, c = x_nhwc.shape
    xp = jnp.pad(x_nhwc, ((0, 0), (1, 1), (1, 1), (0, 0)))
    cols = [xp[:, dy:dy + h, dx:dx + w, :] for dy in range(3) for dx in range(3)]
    return jnp.concatenate(cols, axis=-1).reshape(n * h * w, 9 * c)


def _pack_weight(w_oihw, cout_pad):
    """OIHW -> (9*Cin, Cout_pad) bf16 with K ordering (kh*3+kw)*Cin + ci."""
    cout, cin = w_oihw.shape[0], w_oihw.shape[1]
    w = jnp.transpose(w_oihw, (2, 3, 1, 0)).reshape(9 * cin, cout)
    w = jnp.pad(w, ((0, 0), (0, cout_pad - cout)))
    return w.astype(jnp.bfloat16)


def conv3x3_bn_relu(x_nhwc, w_oihw, gamma, beta, *, out_dtype=jnp.bfloat16,
                    m_tile=None):
    """Conv3x3(pad=1) -> BatchNorm2d(training stats) -> ReLU, NHWC in/out.

    The conv bias is mathematically cancelled by the training-mode BN mean
    subtraction and is therefore never computed."""
    n, h, w, cin = x_nhwc.shape
    cout = w_oihw.shape[0]
    cout_pad = _round_up(cout, LANE)
    k = 9 * cin
    m = n * h * w
    out_bytes = jnp.dtype(out_dtype).itemsize
    if m_tile is None:
        m_tile = _choose_m_tile(m, k, cout_pad, out_bytes)
    m_pad = _round_up(m, m_tile)
    num_tiles = m_pad // m_tile

    # One contiguous packed bf16 slab; padded rows are zero -> contribute
    # nothing to the BN sums (bias dropped), so stats stay exact with true M.
    xcol = _im2col_packed(x_nhwc.astype(jnp.bfloat16))
    if m_pad != m:
        xcol = jnp.pad(xcol, ((0, m_pad - m), (0, 0)))
    wp = _pack_weight(w_oihw, cout_pad)

    # ---- pass A: conv (bf16 out) + per-tile per-channel sum / sum-of-squares
    conv_bf16, stats = pl.pallas_call(
        _conv_stats_kernel,
        grid=(num_tiles,),
        in_specs=[
            pl.BlockSpec((m_tile, k), lambda i: (i, 0)),
            pl.BlockSpec((k, cout_pad), lambda i: (0, 0)),
        ],
        out_specs=[
            pl.BlockSpec((m_tile, cout_pad), lambda i: (i, 0)),
            pl.BlockSpec((8, cout_pad), lambda i: (i, 0)),
        ],
        out_shape=[
            jax.ShapeDtypeStruct((m_pad, cout_pad), jnp.bfloat16),
            jax.ShapeDtypeStruct((8 * num_tiles, cout_pad), jnp.float32),
        ],
        compiler_params=pltpu.CompilerParams(
            dimension_semantics=("parallel",),       # per-tile partials -> megacore OK
            vmem_limit_bytes=VMEM_LIMIT_BYTES),
    )(xcol, wp)

    # ---- fold BN stats + gamma/beta into one per-channel scale & shift ------
    stats = stats.reshape(num_tiles, 8, cout_pad)
    csum = jnp.sum(stats[:, 0, :], axis=0, keepdims=True)
    csq = jnp.sum(stats[:, 1, :], axis=0, keepdims=True)
    gamma_p = jnp.pad(gamma.astype(jnp.float32),
                      (0, cout_pad - cout)).reshape(1, cout_pad)
    beta_p = jnp.pad(beta.astype(jnp.float32),
                     (0, cout_pad - cout)).reshape(1, cout_pad)
    mean = csum / float(m)                                   # true M (not padded)
    var = jnp.maximum(csq / float(m) - mean * mean, 0.0)     # biased var, clamped
    scale = gamma_p * jax.lax.rsqrt(var + BN_EPS)
    shift = beta_p - mean * scale

    # ---- pass B: elementwise fused scale/shift + ReLU, lane-dense output ----
    y = pl.pallas_call(
        _bn_relu_kernel,
        grid=(num_tiles,),
        in_specs=[
            pl.BlockSpec((m_tile, cout_pad), lambda i: (i, 0)),
            pl.BlockSpec((1, cout_pad), lambda i: (0, 0)),
            pl.BlockSpec((1, cout_pad), lambda i: (0, 0)),
        ],
        out_specs=pl.BlockSpec((m_tile, cout_pad), lambda i: (i, 0)),
        out_shape=jax.ShapeDtypeStruct((m_pad, cout_pad), out_dtype),
        compiler_params=pltpu.CompilerParams(
            dimension_semantics=("parallel",),
            vmem_limit_bytes=VMEM_LIMIT_BYTES),
    )(conv_bf16, scale, shift)

    # Strip padding only when it exists (no-op for 128-multiple channel counts
    # and M a multiple of m_tile).
    if m_pad != m:
        y = y[:m]
    if cout_pad != cout:
        y = y[:, :cout]
    return y.reshape(n, h, w, cout)


@functools.partial(jax.jit, static_argnames=("m_tile",))
def double_conv(x_nchw, params, m_tile=None):
    """Pallas implementation of DoubleConv.forward (NCHW in, NCHW out)."""
    x = jnp.transpose(x_nchw, (0, 2, 3, 1))          # NCHW -> NHWC once
    y = conv3x3_bn_relu(x, params["w1_oihw"], params["g1"], params["be1"],
                        out_dtype=jnp.bfloat16, m_tile=m_tile)   # bf16 intermediate
    y = conv3x3_bn_relu(y, params["w2_oihw"], params["g2"], params["be2"],
                        out_dtype=jnp.float32, m_tile=m_tile)
    return jnp.transpose(y, (0, 3, 1, 2))            # NHWC -> NCHW once


# ----------------------------------------------------------------------------
# Pure-JAX reference (independent path through lax.conv) for verification
# ----------------------------------------------------------------------------
def _ref_double_conv(x_nchw, params):
    def conv(x, w_oihw, b):
        y = jax.lax.conv_general_dilated(
            x, w_oihw, window_strides=(1, 1), padding="SAME",
            dimension_numbers=("NCHW", "OIHW", "NCHW"),
            precision=jax.lax.Precision.HIGHEST)
        return y + b[None, :, None, None]

    def bn_relu(x, gamma, beta):
        mean = x.mean(axis=(0, 2, 3), keepdims=True)
        var = ((x - mean) ** 2).mean(axis=(0, 2, 3), keepdims=True)
        y = (x - mean) * jax.lax.rsqrt(var + BN_EPS)
        y = y * gamma[None, :, None, None] + beta[None, :, None, None]
        return jnp.maximum(y, 0.0)

    y = bn_relu(conv(x_nchw, params["w1_oihw"], params["b1"]),
                params["g1"], params["be1"])
    y = bn_relu(conv(y, params["w2_oihw"], params["b2"]),
                params["g2"], params["be2"])
    return y


# ----------------------------------------------------------------------------
def make_params(in_channels, out_channels, mid_channels=None):
    if not mid_channels:
        mid_channels = out_channels
    key = jax.random.PRNGKey(0)
    k1, k2, k3, k4 = jax.random.split(key, 4)

    w1_oihw = jax.random.normal(k1, (mid_channels, in_channels, 3, 3),
                                jnp.float32) * 0.1
    b1 = jax.random.normal(k2, (mid_channels,), jnp.float32) * 0.05
    w2_oihw = jax.random.normal(k3, (out_channels, mid_channels, 3, 3),
                                jnp.float32) * 0.1
    b2 = jax.random.normal(k4, (out_channels,), jnp.float32) * 0.05

    return {
        "w1_oihw": w1_oihw, "b1": b1,                 # bias used only by the reference
        "g1": jnp.ones((mid_channels,), jnp.float32),
        "be1": jnp.zeros((mid_channels,), jnp.float32),
        "w2_oihw": w2_oihw, "b2": b2,
        "g2": jnp.ones((out_channels,), jnp.float32),
        "be2": jnp.zeros((out_channels,), jnp.float32),
    }


if __name__ == "__main__":
    in_channels, out_channels = 4, 8
    params = make_params(in_channels, out_channels)

    x = jax.random.normal(jax.random.PRNGKey(0), (2, in_channels, 16, 16),
                          jnp.float32)

    out = jax.block_until_ready(double_conv(x, params))
    ref = jax.block_until_ready(_ref_double_conv(x, params))

    # bf16 MXU inputs + bf16 conv/intermediate storage vs an f32-HIGHEST
    # reference; post-BN values are O(1), so 1e-1 still catches any structural
    # bug (wrong taps / stats / affine) by orders of magnitude.
    np.testing.assert_allclose(np.asarray(out), np.asarray(ref),
                               rtol=1e-1, atol=1e-1)
    print("KERNEL_OK")
</pallas_src>

<mosaic_0001>
module attributes {stable_mosaic.version = 11 : i64} {
  func.func @_conv_stats_kernel(%arg0: i32, %arg1: memref<512x36xbf16, #tpu.memory_space<vmem>>, %arg2: memref<36x128xbf16, #tpu.memory_space<vmem>>, %arg3: memref<512x128xbf16, #tpu.memory_space<vmem>>, %arg4: memref<8x128xf32, #tpu.memory_space<vmem>>) attributes {dimension_semantics = [#tpu.dimension_semantics<parallel>], iteration_bounds = array<i64: 1>, scalar_prefetch = 0 : i64, scratch_operands = 0 : i64, tpu.core_type = #tpu.core_type<tc>, window_params = [{transform_indices = @transform_0, window_bounds = array<i64: 512, 36>}, {pipeline_mode = #tpu.pipeline_mode<synchronous>, transform_indices = @transform_1, window_bounds = array<i64: 36, 128>}, {transform_indices = @transform_2, window_bounds = array<i64: 512, 128>}, {transform_indices = @transform_3, window_bounds = array<i64: 8, 128>}]} {
    %c0 = arith.constant 0 : index
    %c0_0 = arith.constant 0 : index
    %0 = vector.load %arg1[%c0, %c0_0] : memref<512x36xbf16, #tpu.memory_space<vmem>>, vector<512x36xbf16>
    %c0_1 = arith.constant 0 : index
    %c0_2 = arith.constant 0 : index
    %1 = vector.load %arg2[%c0_1, %c0_2] : memref<36x128xbf16, #tpu.memory_space<vmem>>, vector<36x128xbf16>
    %cst = arith.constant dense<0.000000e+00> : vector<512x128xf32>
    %2 = tpu.matmul %0, %1, %cst {dimension_numbers = #tpu.dot_dimension_numbers<[1], [0], [0], [1], [0, 0, 1, 1], [], []>} : vector<512x36xbf16>, vector<36x128xbf16>, vector<512x128xf32> -> vector<512x128xf32>
    %3 = arith.truncf %2 : vector<512x128xf32> to vector<512x128xbf16>
    %c0_3 = arith.constant 0 : index
    %c0_4 = arith.constant 0 : index
    %4 = vector.load %arg3[%c0_3, %c0_4] : memref<512x128xbf16, #tpu.memory_space<vmem>>, vector<512x128xbf16>
    tpu.vector_store %arg3[%c0_3, %c0_4], %3 {strides = array<i32>} : memref<512x128xbf16, #tpu.memory_space<vmem>>, vector<512x128xbf16>,
    %cst_5 = arith.constant dense<0.000000e+00> : vector<128xf32>
    %5 = vector.multi_reduction <add>, %2, %cst_5 [0] : vector<512x128xf32> to vector<128xf32>
    %6 = vector.shape_cast %5 : vector<128xf32> to vector<1x128xf32>
    %7 = arith.mulf %2, %2 : vector<512x128xf32>
    %cst_6 = arith.constant dense<0.000000e+00> : vector<128xf32>
    %8 = vector.multi_reduction <add>, %7, %cst_6 [0] : vector<512x128xf32> to vector<128xf32>
    %9 = vector.shape_cast %8 : vector<128xf32> to vector<1x128xf32>
    %cst_7 = arith.constant 0.000000e+00 : f32
    %10 = vector.broadcast %cst_7 : f32 to vector<6x128xf32>
    %11 = tpu.concatenate %6, %9, %10 in 0 : vector<1x128xf32>, vector<1x128xf32>, vector<6x128xf32> -> vector<8x128xf32>
    %c0_8 = arith.constant 0 : index
    %c0_9 = arith.constant 0 : index
    %12 = vector.load %arg4[%c0_8, %c0_9] : memref<8x128xf32, #tpu.memory_space<vmem>>, vector<8x128xf32>
    tpu.vector_store %arg4[%c0_8, %c0_9], %11 {strides = array<i32>} : memref<8x128xf32, #tpu.memory_space<vmem>>, vector<8x128xf32>,
    return
  }
  func.func @transform_0(%arg0: i32) -> (i32, i32) {
    %c0_i32 = arith.constant 0 : i32
    %c0_i32_0 = arith.constant 0 : i32
    return %arg0, %c0_i32 : i32, i32
  }
  func.func @transform_1(%arg0: i32) -> (i32, i32) {
    %c0_i32 = arith.constant 0 : i32
    %c0_i32_0 = arith.constant 0 : i32
    %c0_i32_1 = arith.constant 0 : i32
    return %c0_i32, %c0_i32_0 : i32, i32
  }
  func.func @transform_2(%arg0: i32) -> (i32, i32) {
    %c0_i32 = arith.constant 0 : i32
    %c0_i32_0 = arith.constant 0 : i32
    return %arg0, %c0_i32 : i32, i32
  }
  func.func @transform_3(%arg0: i32) -> (i32, i32) {
    %c0_i32 = arith.constant 0 : i32
    %c0_i32_0 = arith.constant 0 : i32
    return %arg0, %c0_i32 : i32, i32
  }
}

module attributes {stable_mosaic.version = 11 : i64} {
  func.func @_bn_relu_kernel(%arg0: i32, %arg1: memref<512x128xbf16, #tpu.memory_space<vmem>>, %arg2: memref<1x128xf32, #tpu.memory_space<vmem>>, %arg3: memref<1x128xf32, #tpu.memory_space<vmem>>, %arg4: memref<512x128xbf16, #tpu.memory_space<vmem>>) attributes {dimension_semantics = [#tpu.dimension_semantics<parallel>], iteration_bounds = array<i64: 1>, scalar_prefetch = 0 : i64, scratch_operands = 0 : i64, tpu.core_type = #tpu.core_type<tc>, window_params = [{transform_indices = @transform_0, window_bounds = array<i64: 512, 128>}, {pipeline_mode = #tpu.pipeline_mode<synchronous>, transform_indices = @transform_1, window_bounds = array<i64: 1, 128>}, {pipeline_mode = #tpu.pipeline_mode<synchronous>, transform_indices = @transform_2, window_bounds = array<i64: 1, 128>}, {transform_indices = @transform_3, window_bounds = array<i64: 512, 128>}]} {
    %c0 = arith.constant 0 : index
    %c0_0 = arith.constant 0 : index
    %0 = vector.load %arg1[%c0, %c0_0] : memref<512x128xbf16, #tpu.memory_space<vmem>>, vector<512x128xbf16>
    %1 = arith.extf %0 : vector<512x128xbf16> to vector<512x128xf32>
    %c0_1 = arith.constant 0 : index
    %c0_2 = arith.constant 0 : index
    %2 = vector.load %arg2[%c0_1, %c0_2] : memref<1x128xf32, #tpu.memory_space<vmem>>, vector<1x128xf32>
    %3 = vector.broadcast %2 : vector<1x128xf32> to vector<512x128xf32>
    %4 = arith.mulf %1, %3 : vector<512x128xf32>
    %c0_3 = arith.constant 0 : index
    %c0_4 = arith.constant 0 : index
    %5 = vector.load %arg3[%c0_3, %c0_4] : memref<1x128xf32, #tpu.memory_space<vmem>>, vector<1x128xf32>
    %6 = vector.broadcast %5 : vector<1x128xf32> to vector<512x128xf32>
    %7 = arith.addf %4, %6 : vector<512x128xf32>
    %cst = arith.constant 0.000000e+00 : f32
    %8 = vector.broadcast %cst : f32 to vector<512x128xf32>
    %9 = arith.maximumf %7, %8 : vector<512x128xf32>
    %10 = arith.truncf %9 : vector<512x128xf32> to vector<512x128xbf16>
    %c0_5 = arith.constant 0 : index
    %c0_6 = arith.constant 0 : index
    %11 = vector.load %arg4[%c0_5, %c0_6] : memref<512x128xbf16, #tpu.memory_space<vmem>>, vector<512x128xbf16>
    tpu.vector_store %arg4[%c0_5, %c0_6], %10 {strides = array<i32>} : memref<512x128xbf16, #tpu.memory_space<vmem>>, vector<512x128xbf16>,
    return
  }
  func.func @transform_0(%arg0: i32) -> (i32, i32) {
    %c0_i32 = arith.constant 0 : i32
    %c0_i32_0 = arith.constant 0 : i32
    return %arg0, %c0_i32 : i32, i32
  }
  func.func @transform_1(%arg0: i32) -> (i32, i32) {
    %c0_i32 = arith.constant 0 : i32
    %c0_i32_0 = arith.constant 0 : i32
    %c0_i32_1 = arith.constant 0 : i32
    return %c0_i32, %c0_i32_0 : i32, i32
  }
  func.func @transform_2(%arg0: i32) -> (i32, i32) {
    %c0_i32 = arith.constant 0 : i32
    %c0_i32_0 = arith.constant 0 : i32
    %c0_i32_1 = arith.constant 0 : i32
    return %c0_i32, %c0_i32_0 : i32, i32
  }
  func.func @transform_3(%arg0: i32) -> (i32, i32) {
    %c0_i32 = arith.constant 0 : i32
    %c0_i32_0 = arith.constant 0 : i32
    return %arg0, %c0_i32 : i32, i32
  }
}

module attributes {stable_mosaic.version = 11 : i64} {
  func.func @_conv_stats_kernel(%arg0: i32, %arg1: memref<512x72xbf16, #tpu.memory_space<vmem>>, %arg2: memref<72x128xbf16, #tpu.memory_space<vmem>>, %arg3: memref<512x128xbf16, #tpu.memory_space<vmem>>, %arg4: memref<8x128xf32, #tpu.memory_space<vmem>>) attributes {dimension_semantics = [#tpu.dimension_semantics<parallel>], iteration_bounds = array<i64: 1>, scalar_prefetch = 0 : i64, scratch_operands = 0 : i64, tpu.core_type = #tpu.core_type<tc>, window_params = [{transform_indices = @transform_0, window_bounds = array<i64: 512, 72>}, {pipeline_mode = #tpu.pipeline_mode<synchronous>, transform_indices = @transform_1, window_bounds = array<i64: 72, 128>}, {transform_indices = @transform_2, window_bounds = array<i64: 512, 128>}, {transform_indices = @transform_3, window_bounds = array<i64: 8, 128>}]} {
    %c0 = arith.constant 0 : index
    %c0_0 = arith.constant 0 : index
    %0 = vector.load %arg1[%c0, %c0_0] : memref<512x72xbf16, #tpu.memory_space<vmem>>, vector<512x72xbf16>
    %c0_1 = arith.constant 0 : index
    %c0_2 = arith.constant 0 : index
    %1 = vector.load %arg2[%c0_1, %c0_2] : memref<72x128xbf16, #tpu.memory_space<vmem>>, vector<72x128xbf16>
    %cst = arith.constant dense<0.000000e+00> : vector<512x128xf32>
    %2 = tpu.matmul %0, %1, %cst {dimension_numbers = #tpu.dot_dimension_numbers<[1], [0], [0], [1], [0, 0, 1, 1], [], []>} : vector<512x72xbf16>, vector<72x128xbf16>, vector<512x128xf32> -> vector<512x128xf32>
    %3 = arith.truncf %2 : vector<512x128xf32> to vector<512x128xbf16>
    %c0_3 = arith.constant 0 : index
    %c0_4 = arith.constant 0 : index
    %4 = vector.load %arg3[%c0_3, %c0_4] : memref<512x128xbf16, #tpu.memory_space<vmem>>, vector<512x128xbf16>
    tpu.vector_store %arg3[%c0_3, %c0_4], %3 {strides = array<i32>} : memref<512x128xbf16, #tpu.memory_space<vmem>>, vector<512x128xbf16>,
    %cst_5 = arith.constant dense<0.000000e+00> : vector<128xf32>
    %5 = vector.multi_reduction <add>, %2, %cst_5 [0] : vector<512x128xf32> to vector<128xf32>
    %6 = vector.shape_cast %5 : vector<128xf32> to vector<1x128xf32>
    %7 = arith.mulf %2, %2 : vector<512x128xf32>
    %cst_6 = arith.constant dense<0.000000e+00> : vector<128xf32>
    %8 = vector.multi_reduction <add>, %7, %cst_6 [0] : vector<512x128xf32> to vector<128xf32>
    %9 = vector.shape_cast %8 : vector<128xf32> to vector<1x128xf32>
    %cst_7 = arith.constant 0.000000e+00 : f32
    %10 = vector.broadcast %cst_7 : f32 to vector<6x128xf32>
    %11 = tpu.concatenate %6, %9, %10 in 0 : vector<1x128xf32>, vector<1x128xf32>, vector<6x128xf32> -> vector<8x128xf32>
    %c0_8 = arith.constant 0 : index
    %c0_9 = arith.constant 0 : index
    %12 = vector.load %arg4[%c0_8, %c0_9] : memref<8x128xf32, #tpu.memory_space<vmem>>, vector<8x128xf32>
    tpu.vector_store %arg4[%c0_8, %c0_9], %11 {strides = array<i32>} : memref<8x128xf32, #tpu.memory_space<vmem>>, vector<8x128xf32>,
    return
  }
  func.func @transform_0(%arg0: i32) -> (i32, i32) {
    %c0_i32 = arith.constant 0 : i32
    %c0_i32_0 = arith.constant 0 : i32
    return %arg0, %c0_i32 : i32, i32
  }
  func.func @transform_1(%arg0: i32) -> (i32, i32) {
    %c0_i32 = arith.constant 0 : i32
    %c0_i32_0 = arith.constant 0 : i32
    %c0_i32_1 = arith.constant 0 : i32
    return %c0_i32, %c0_i32_0 : i32, i32
  }
  func.func @transform_2(%arg0: i32) -> (i32, i32) {
    %c0_i32 = arith.constant 0 : i32
    %c0_i32_0 = arith.constant 0 : i32
    return %arg0, %c0_i32 : i32, i32
  }
  func.func @transform_3(%arg0: i32) -> (i32, i32) {
    %c0_i32 = arith.constant 0 : i32
    %c0_i32_0 = arith.constant 0 : i32
    return %arg0, %c0_i32 : i32, i32
  }
}

module attributes {stable_mosaic.version = 11 : i64} {
  func.func @_bn_relu_kernel(%arg0: i32, %arg1: memref<512x128xbf16, #tpu.memory_space<vmem>>, %arg2: memref<1x128xf32, #tpu.memory_space<vmem>>, %arg3: memref<1x128xf32, #tpu.memory_space<vmem>>, %arg4: memref<512x128xf32, #tpu.memory_space<vmem>>) attributes {dimension_semantics = [#tpu.dimension_semantics<parallel>], iteration_bounds = array<i64: 1>, scalar_prefetch = 0 : i64, scratch_operands = 0 : i64, tpu.core_type = #tpu.core_type<tc>, window_params = [{transform_indices = @transform_0, window_bounds = array<i64: 512, 128>}, {pipeline_mode = #tpu.pipeline_mode<synchronous>, transform_indices = @transform_1, window_bounds = array<i64: 1, 128>}, {pipeline_mode = #tpu.pipeline_mode<synchronous>, transform_indices = @transform_2, window_bounds = array<i64: 1, 128>}, {transform_indices = @transform_3, window_bounds = array<i64: 512, 128>}]} {
    %c0 = arith.constant 0 : index
    %c0_0 = arith.constant 0 : index
    %0 = vector.load %arg1[%c0, %c0_0] : memref<512x128xbf16, #tpu.memory_space<vmem>>, vector<512x128xbf16>
    %1 = arith.extf %0 : vector<512x128xbf16> to vector<512x128xf32>
    %c0_1 = arith.constant 0 : index
    %c0_2 = arith.constant 0 : index
    %2 = vector.load %arg2[%c0_1, %c0_2] : memref<1x128xf32, #tpu.memory_space<vmem>>, vector<1x128xf32>
    %3 = vector.broadcast %2 : vector<1x128xf32> to vector<512x128xf32>
    %4 = arith.mulf %1, %3 : vector<512x128xf32>
    %c0_3 = arith.constant 0 : index
    %c0_4 = arith.constant 0 : index
    %5 = vector.load %arg3[%c0_3, %c0_4] : memref<1x128xf32, #tpu.memory_space<vmem>>, vector<1x128xf32>
    %6 = vector.broadcast %5 : vector<1x128xf32> to vector<512x128xf32>
    %7 = arith.addf %4, %6 : vector<512x128xf32>
    %cst = arith.constant 0.000000e+00 : f32
    %8 = vector.broadcast %cst : f32 to vector<512x128xf32>
    %9 = arith.maximumf %7, %8 : vector<512x128xf32>
    %c0_5 = arith.constant 0 : index
    %c0_6 = arith.constant 0 : index
    %10 = vector.load %arg4[%c0_5, %c0_6] : memref<512x128xf32, #tpu.memory_space<vmem>>, vector<512x128xf32>
    tpu.vector_store %arg4[%c0_5, %c0_6], %9 {strides = array<i32>} : memref<512x128xf32, #tpu.memory_space<vmem>>, vector<512x128xf32>,
    return
  }
  func.func @transform_0(%arg0: i32) -> (i32, i32) {
    %c0_i32 = arith.constant 0 : i32
    %c0_i32_0 = arith.constant 0 : i32
    return %arg0, %c0_i32 : i32, i32
  }
  func.func @transform_1(%arg0: i32) -> (i32, i32) {
    %c0_i32 = arith.constant 0 : i32
    %c0_i32_0 = arith.constant 0 : i32
    %c0_i32_1 = arith.constant 0 : i32
    return %c0_i32, %c0_i32_0 : i32, i32
  }
  func.func @transform_2(%arg0: i32) -> (i32, i32) {
    %c0_i32 = arith.constant 0 : i32
    %c0_i32_0 = arith.constant 0 : i32
    %c0_i32_1 = arith.constant 0 : i32
    return %c0_i32, %c0_i32_0 : i32, i32
  }
  func.func @transform_3(%arg0: i32) -> (i32, i32) {
    %c0_i32 = arith.constant 0 : i32
    %c0_i32_0 = arith.constant 0 : i32
    return %arg0, %c0_i32 : i32, i32
  }
}

</mosaic_0001>

<bundles_post_ra>
// kernel: double_conv.5
= control target key start
LH: loop header
LB: loop body
LE: loop exit
PB: predicated region body
PF: predicated region fallthrough
CT: control target
= control target key end

     0   :  { %s1502_s0 = inlined_call_operand.vmem [shape: bf16[512,128], index: 0, kind: input, shape index: {}]   ;;  %s1503_s1 = inlined_call_operand.vmem [shape: f32[1,128], index: 1, kind: input, shape index: {}]   ;;  %s1504_s2 = inlined_call_operand.vmem [shape: f32[1,128], index: 2, kind: input, shape index: {}]   ;;  %s1505_s3 = inlined_call_operand.vmem [shape: bf16[512,128], index: 3, kind: output, shape index: {}]  }
   0x1   :  { %v803_v0 = vld [vmem:[%s1502_s0] sm:$0xff]   ;;  %v1090_v4 = vld [vmem:[%s1502_s0 + $0x8] sm:$0xff]   ;;  %v1091_v5 = vld [vmem:[%s1502_s0 + $0x10] sm:$0xff]  }
   0x2   :  { %v1178_v1 = vld [vmem:[%s1503_s1] ss:$0 sm:$0xff]  ;;  %v804_v2 = vunpack.c.l.bf16 %v803_v0  ;;  %v805_v3 = vunpack.c.h.bf16 %v803_v0  ;;  %v1092_v6 = vld [vmem:[%s1502_s0 + $0x18] sm:$0xff]   ;;  %v808_v8 = vunpack.c.l.bf16 %v1090_v4  ;;  %v809_v9 = vunpack.c.h.bf16 %v1090_v4  ;;  %v1094_v33 = vld [vmem:[%s1502_s0 + $0x28] sm:$0xff]  }
   0x3   :  { %v1192_v7 = vld [vmem:[%s1504_s2] ss:$0 sm:$0xff]  ;;  %v812_v10 = vunpack.c.l.bf16 %v1091_v5  ;;  %v813_v11 = vunpack.c.h.bf16 %v1091_v5  ;;  %v816_v14 = vunpack.c.l.bf16 %v1092_v6  ;;  %v817_v15 = vunpack.c.h.bf16 %v1092_v6  ;;  %v1095_v38 = vld [vmem:[%s1502_s0 + $0x30] sm:$0xff]   ;;  %v1096_v43 = vld [vmem:[%s1502_s0 + $0x38] sm:$0xff]  }
   0x4   :  { %v149_v12 = vmul.f32 %v804_v2, %v1178_v1  ;;  %v150_v13 = vmul.f32 %v805_v3, %v1178_v1  ;;  %v151_v16 = vmul.f32 %v808_v8, %v1178_v1  ;;  %v152_v17 = vmul.f32 %v809_v9, %v1178_v1  ;;  %v1093_v28 = vld [vmem:[%s1502_s0 + $0x20] sm:$0xff]  }
   0x5   :  { %v153_v18 = vmul.f32 %v812_v10, %v1178_v1  ;;  %v154_v19 = vmul.f32 %v813_v11, %v1178_v1  ;;  %v155_v22 = vmul.f32 %v816_v14, %v1178_v1  ;;  %v156_v23 = vmul.f32 %v817_v15, %v1178_v1  ;;  %v1097_v0 = vld [vmem:[%s1502_s0 + $0x40] sm:$0xff]   ;;  %v1098_v11 = vld [vmem:[%s1502_s0 + $0x48] sm:$0xff]  }
   0x6   :  { %v220_v20 = vadd.f32 %v1192_v7, %v149_v12  ;;  %v221_v21 = vadd.f32 %v1192_v7, %v150_v13  ;;  %v222_v24 = vadd.f32 %v1192_v7, %v151_v16  ;;  %v223_v25 = vadd.f32 %v1192_v7, %v152_v17  ;;  %v1099_v16 = vld [vmem:[%s1502_s0 + $0x50] sm:$0xff]  }
   0x7   :  { %v224_v26 = vadd.f32 %v1192_v7, %v153_v18  ;;  %v225_v27 = vadd.f32 %v1192_v7, %v154_v19  ;;  %v226_v31 = vadd.f32 %v1192_v7, %v155_v22  ;;  %v227_v32 = vadd.f32 %v1192_v7, %v156_v23 }
   0x8   :  { %v284_v29 = vmax.f32 %v220_v20, 0.0  ;;  %v285_v30 = vmax.f32 %v221_v21, 0.0  ;;  %v286_v34 = vmax.f32 %v222_v24, 0.0  ;;  %v287_v35 = vmax.f32 %v223_v25, 0.0  ;;  %v1100_v25 = vld [vmem:[%s1502_s0 + $0x58] sm:$0xff]  }
   0x9   :  { %v288_v36 = vmax.f32 %v224_v26, 0.0  ;;  %v289_v37 = vmax.f32 %v225_v27, 0.0  ;;  %v290_v40 = vmax.f32 %v226_v31, 0.0  ;;  %v291_v41 = vmax.f32 %v227_v32, 0.0 }
   0xa   :  { %v933_v39 = vpack.c.bf16 %v285_v30, %v284_v29  ;;  %v820_v42 = vunpack.c.l.bf16 %v1093_v28  ;;  %v938_v44 = vpack.c.bf16 %v287_v35, %v286_v34  ;;  %v821_v46 = vunpack.c.h.bf16 %v1093_v28 }
   0xb   :  { %v943_v45 = vpack.c.bf16 %v289_v37, %v288_v36  ;;  %v824_v47 = vunpack.c.l.bf16 %v1094_v33  ;;  %v948_v48 = vpack.c.bf16 %v291_v41, %v290_v40  ;;  %v825_v50 = vunpack.c.h.bf16 %v1094_v33 }
   0xc   :  { %934 = vst [vmem:[%s1505_s3] sm:$0xff] %v933_v39   ;;  %v157_v49 = vmul.f32 %v820_v42, %v1178_v1  ;;  %v828_v51 = vunpack.c.l.bf16 %v1095_v38  ;;  %1121 = vst [vmem:[%s1505_s3 + $0x8] sm:$0xff] %v938_v44   ;;  %v158_v52 = vmul.f32 %v821_v46, %v1178_v1  ;;  %v829_v54 = vunpack.c.h.bf16 %v1095_v38  ;;  %v1101_v38 = vld [vmem:[%s1502_s0 + $0x60] sm:$0xff]  }
   0xd   :  { %1122 = vst [vmem:[%s1505_s3 + $0x10] sm:$0xff] %v943_v45   ;;  %v159_v53 = vmul.f32 %v824_v47, %v1178_v1  ;;  %v832_v55 = vunpack.c.l.bf16 %v1096_v43  ;;  %1123 = vst [vmem:[%s1505_s3 + $0x18] sm:$0xff] %v948_v48   ;;  %v160_v57 = vmul.f32 %v825_v50, %v1178_v1  ;;  %v833_v59 = vunpack.c.h.bf16 %v1096_v43 }
   0xe   :  { %v228_v56 = vadd.f32 %v1192_v7, %v157_v49  ;;  %v161_v58 = vmul.f32 %v828_v51, %v1178_v1  ;;  %v229_v60 = vadd.f32 %v1192_v7, %v158_v52  ;;  %v162_v62 = vmul.f32 %v829_v54, %v1178_v1  ;;  %v1102_v51 = vld [vmem:[%s1502_s0 + $0x68] sm:$0xff]  }
   0xf   :  { %v230_v61 = vadd.f32 %v1192_v7, %v159_v53  ;;  %v163_v63 = vmul.f32 %v832_v55, %v1178_v1  ;;  %v231_v3 = vadd.f32 %v1192_v7, %v160_v57  ;;  %v164_v5 = vmul.f32 %v833_v59, %v1178_v1 }
  0x10   :  { %v292_v2 = vmax.f32 %v228_v56, 0.0  ;;  %v232_v4 = vadd.f32 %v1192_v7, %v161_v58  ;;  %v293_v6 = vmax.f32 %v229_v60, 0.0  ;;  %v233_v9 = vadd.f32 %v1192_v7, %v162_v62  ;;  %v1103_v60 = vld [vmem:[%s1502_s0 + $0x70] sm:$0xff]  }
  0x11   :  { %v294_v8 = vmax.f32 %v230_v61, 0.0  ;;  %v234_v10 = vadd.f32 %v1192_v7, %v163_v63  ;;  %v295_v12 = vmax.f32 %v231_v3, 0.0  ;;  %v235_v14 = vadd.f32 %v1192_v7, %v164_v5 }
  0x12   :  { %v296_v13 = vmax.f32 %v232_v4, 0.0  ;;  %v836_v15 = vunpack.c.l.bf16 %v1097_v0  ;;  %v953_v17 = vpack.c.bf16 %v293_v6, %v292_v2  ;;  %v297_v18 = vmax.f32 %v233_v9, 0.0  ;;  %v1104_v2 = vld [vmem:[%s1502_s0 + $0x78] sm:$0xff]  }
  0x13   :  { %v298_v19 = vmax.f32 %v234_v10, 0.0  ;;  %v837_v20 = vunpack.c.h.bf16 %v1097_v0  ;;  %v958_v21 = vpack.c.bf16 %v295_v12, %v294_v8  ;;  %v299_v22 = vmax.f32 %v235_v14, 0.0  ;;  %v1105_v12 = vld [vmem:[%s1502_s0 + $0x80] sm:$0xff]  }
  0x14   :  { %v165_v23 = vmul.f32 %v836_v15, %v1178_v1  ;;  %v840_v24 = vunpack.c.l.bf16 %v1098_v11  ;;  %1124 = vst [vmem:[%s1505_s3 + $0x20] sm:$0xff] %v953_v17   ;;  %v963_v26 = vpack.c.bf16 %v297_v18, %v296_v13  ;;  %v841_v28 = vunpack.c.h.bf16 %v1098_v11 }
  0x15   :  { %v166_v27 = vmul.f32 %v837_v20, %v1178_v1  ;;  %v844_v29 = vunpack.c.l.bf16 %v1099_v16  ;;  %1125 = vst [vmem:[%s1505_s3 + $0x28] sm:$0xff] %v958_v21   ;;  %v968_v30 = vpack.c.bf16 %v299_v22, %v298_v19  ;;  %v845_v33 = vunpack.c.h.bf16 %v1099_v16 }
  0x16   :  { %v236_v31 = vadd.f32 %v1192_v7, %v165_v23  ;;  %v167_v32 = vmul.f32 %v840_v24, %v1178_v1  ;;  %1126 = vst [vmem:[%s1505_s3 + $0x30] sm:$0xff] %v963_v26   ;;  %v168_v35 = vmul.f32 %v841_v28, %v1178_v1  ;;  %v848_v37 = vunpack.c.l.bf16 %v1100_v25 }
  0x17   :  { %v237_v34 = vadd.f32 %v1192_v7, %v166_v27  ;;  %v169_v36 = vmul.f32 %v844_v29, %v1178_v1  ;;  %1127 = vst [vmem:[%s1505_s3 + $0x38] sm:$0xff] %v968_v30   ;;  %v170_v41 = vmul.f32 %v845_v33, %v1178_v1  ;;  %v849_v42 = vunpack.c.h.bf16 %v1100_v25  ;;  %v1106_v29 = vld [vmem:[%s1502_s0 + $0x88] sm:$0xff]  }
  0x18   :  { %v300_v39 = vmax.f32 %v236_v31, 0.0  ;;  %v238_v40 = vadd.f32 %v1192_v7, %v167_v32  ;;  %v239_v44 = vadd.f32 %v1192_v7, %v168_v35  ;;  %v171_v46 = vmul.f32 %v848_v37, %v1178_v1 }
  0x19   :  { %v301_v43 = vmax.f32 %v237_v34, 0.0  ;;  %v240_v45 = vadd.f32 %v1192_v7, %v169_v36  ;;  %v241_v48 = vadd.f32 %v1192_v7, %v170_v41  ;;  %v172_v49 = vmul.f32 %v849_v42, %v1178_v1  ;;  %v1107_v34 = vld [vmem:[%s1502_s0 + $0x90] sm:$0xff]  }
  0x1a   :  { %v302_v47 = vmax.f32 %v238_v40, 0.0  ;;  %v852_v50 = vunpack.c.l.bf16 %v1101_v38  ;;  %v303_v53 = vmax.f32 %v239_v44, 0.0  ;;  %v242_v55 = vadd.f32 %v1192_v7, %v171_v46 }
  0x1b   :  { %v973_v52 = vpack.c.bf16 %v301_v43, %v300_v39  ;;  %v304_v54 = vmax.f32 %v240_v45, 0.0  ;;  %v305_v56 = vmax.f32 %v241_v48, 0.0  ;;  %v243_v57 = vadd.f32 %v1192_v7, %v172_v49  ;;  %v1108_v43 = vld [vmem:[%s1502_s0 + $0x98] sm:$0xff]  }
  0x1c   :  { %v853_v58 = vunpack.c.h.bf16 %v1101_v38  ;;  %v173_v59 = vmul.f32 %v852_v50, %v1178_v1  ;;  %v978_v61 = vpack.c.bf16 %v303_v53, %v302_v47  ;;  %v306_v62 = vmax.f32 %v242_v55, 0.0 }
  0x1d   :  { %1128 = vst [vmem:[%s1505_s3 + $0x40] sm:$0xff] %v973_v52   ;;  %v856_v63 = vunpack.c.l.bf16 %v1102_v51  ;;  %v857_v0 = vunpack.c.h.bf16 %v1102_v51  ;;  %v983_v3 = vpack.c.bf16 %v305_v56, %v304_v54  ;;  %v307_v4 = vmax.f32 %v243_v57, 0.0  ;;  %v1109_v56 = vld [vmem:[%s1502_s0 + $0xa0] sm:$0xff]  }
  0x1e   :  { %v174_v5 = vmul.f32 %v853_v58, %v1178_v1  ;;  %v244_v6 = vadd.f32 %v1192_v7, %v173_v59  ;;  %1129 = vst [vmem:[%s1505_s3 + $0x48] sm:$0xff] %v978_v61   ;;  %v860_v10 = vunpack.c.l.bf16 %v1103_v60  ;;  %v861_v11 = vunpack.c.h.bf16 %v1103_v60 }
  0x1f   :  { %v175_v8 = vmul.f32 %v856_v63, %v1178_v1  ;;  %v176_v9 = vmul.f32 %v857_v0, %v1178_v1  ;;  %1130 = vst [vmem:[%s1505_s3 + $0x50] sm:$0xff] %v983_v3   ;;  %v988_v13 = vpack.c.bf16 %v307_v4, %v306_v62  ;;  %v864_v16 = vunpack.c.l.bf16 %v1104_v2 }
  0x20   :  { %v245_v14 = vadd.f32 %v1192_v7, %v174_v5  ;;  %v308_v15 = vmax.f32 %v244_v6, 0.0  ;;  %v177_v19 = vmul.f32 %v860_v10, %v1178_v1  ;;  %v178_v20 = vmul.f32 %v861_v11, %v1178_v1 }
  0x21   :  { %v246_v17 = vadd.f32 %v1192_v7, %v175_v8  ;;  %v247_v18 = vadd.f32 %v1192_v7, %v176_v9  ;;  %1131 = vst [vmem:[%s1505_s3 + $0x58] sm:$0xff] %v988_v13   ;;  %v865_v22 = vunpack.c.h.bf16 %v1104_v2  ;;  %v179_v23 = vmul.f32 %v864_v16, %v1178_v1  ;;  %v1110_v2 = vld [vmem:[%s1502_s0 + $0xa8] sm:$0xff]   ;;  %v1111_v16 = vld [vmem:[%s1502_s0 + $0xb0] sm:$0xff]  }
  0x22   :  { %v309_v21 = vmax.f32 %v245_v14, 0.0  ;;  %v868_v24 = vunpack.c.l.bf16 %v1105_v12  ;;  %v248_v27 = vadd.f32 %v1192_v7, %v177_v19  ;;  %v249_v28 = vadd.f32 %v1192_v7, %v178_v20 }
  0x23   :  { %v310_v25 = vmax.f32 %v246_v17, 0.0  ;;  %v311_v26 = vmax.f32 %v247_v18, 0.0  ;;  %v180_v31 = vmul.f32 %v865_v22, %v1178_v1  ;;  %v250_v32 = vadd.f32 %v1192_v7, %v179_v23 }
  0x24   :  { %v993_v30 = vpack.c.bf16 %v309_v21, %v308_v15  ;;  %v869_v33 = vunpack.c.h.bf16 %v1105_v12  ;;  %v312_v36 = vmax.f32 %v248_v27, 0.0  ;;  %v313_v37 = vmax.f32 %v249_v28, 0.0  ;;  %v1112_v21 = vld [vmem:[%s1502_s0 + $0xb8] sm:$0xff]  }
  0x25   :  { %v998_v35 = vpack.c.bf16 %v311_v26, %v310_v25  ;;  %v181_v38 = vmul.f32 %v868_v24, %v1178_v1  ;;  %v251_v39 = vadd.f32 %v1192_v7, %v180_v31  ;;  %v314_v40 = vmax.f32 %v250_v32, 0.0 }
  0x26   :  { %1132 = vst [vmem:[%s1505_s3 + $0x60] sm:$0xff] %v993_v30   ;;  %v182_v41 = vmul.f32 %v869_v33, %v1178_v1  ;;  %v872_v42 = vunpack.c.l.bf16 %v1106_v29  ;;  %v1003_v44 = vpack.c.bf16 %v313_v37, %v312_v36  ;;  %v873_v46 = vunpack.c.h.bf16 %v1106_v29 }
  0x27   :  { %1133 = vst [vmem:[%s1505_s3 + $0x68] sm:$0xff] %v998_v35   ;;  %v252_v45 = vadd.f32 %v1192_v7, %v181_v38  ;;  %v876_v47 = vunpack.c.l.bf16 %v1107_v34  ;;  %v315_v48 = vmax.f32 %v251_v39, 0.0  ;;  %v877_v51 = vunpack.c.h.bf16 %v1107_v34  ;;  %v1113_v34 = vld [vmem:[%s1502_s0 + $0xc0] sm:$0xff]  }
  0x28   :  { %v253_v49 = vadd.f32 %v1192_v7, %v182_v41  ;;  %v183_v50 = vmul.f32 %v872_v42, %v1178_v1  ;;  %1134 = vst [vmem:[%s1505_s3 + $0x70] sm:$0xff] %v1003_v44   ;;  %v184_v53 = vmul.f32 %v873_v46, %v1178_v1  ;;  %v880_v55 = vunpack.c.l.bf16 %v1108_v43 }
  0x29   :  { %v316_v52 = vmax.f32 %v252_v45, 0.0  ;;  %v185_v54 = vmul.f32 %v876_v47, %v1178_v1  ;;  %v1008_v57 = vpack.c.bf16 %v315_v48, %v314_v40  ;;  %v186_v60 = vmul.f32 %v877_v51, %v1178_v1  ;;  %v1114_v47 = vld [vmem:[%s1502_s0 + $0xc8] sm:$0xff]  }
  0x2a   :  { %v317_v58 = vmax.f32 %v253_v49, 0.0  ;;  %v254_v59 = vadd.f32 %v1192_v7, %v183_v50  ;;  %v255_v61 = vadd.f32 %v1192_v7, %v184_v53  ;;  %v881_v63 = vunpack.c.h.bf16 %v1108_v43 }
  0x2b   :  { %v256_v62 = vadd.f32 %v1192_v7, %v185_v54  ;;  %v187_v0 = vmul.f32 %v880_v55, %v1178_v1  ;;  %1135 = vst [vmem:[%s1505_s3 + $0x78] sm:$0xff] %v1008_v57   ;;  %v257_v5 = vadd.f32 %v1192_v7, %v186_v60  ;;  %v884_v6 = vunpack.c.l.bf16 %v1109_v56 }
  0x2c   :  { %v1013_v3 = vpack.c.bf16 %v317_v58, %v316_v52  ;;  %v318_v4 = vmax.f32 %v254_v59, 0.0  ;;  %v319_v8 = vmax.f32 %v255_v61, 0.0  ;;  %v188_v10 = vmul.f32 %v881_v63, %v1178_v1  ;;  %v1115_v52 = vld [vmem:[%s1502_s0 + $0xd0] sm:$0xff]   ;;  %v1116_v61 = vld [vmem:[%s1502_s0 + $0xd8] sm:$0xff]  }
  0x2d   :  { %v320_v9 = vmax.f32 %v256_v62, 0.0  ;;  %v258_v11 = vadd.f32 %v1192_v7, %v187_v0  ;;  %v321_v12 = vmax.f32 %v257_v5, 0.0  ;;  %v885_v13 = vunpack.c.h.bf16 %v1109_v56 }
  0x2e   :  { %1136 = vst [vmem:[%s1505_s3 + $0x80] sm:$0xff] %v1013_v3   ;;  %v189_v14 = vmul.f32 %v884_v6, %v1178_v1  ;;  %v888_v15 = vunpack.c.l.bf16 %v1110_v2  ;;  %v1018_v17 = vpack.c.bf16 %v319_v8, %v318_v4  ;;  %v259_v18 = vadd.f32 %v1192_v7, %v188_v10 }
  0x2f   :  { %v322_v19 = vmax.f32 %v258_v11, 0.0  ;;  %v889_v20 = vunpack.c.h.bf16 %v1110_v2  ;;  %v1023_v22 = vpack.c.bf16 %v321_v12, %v320_v9  ;;  %v190_v23 = vmul.f32 %v885_v13, %v1178_v1  ;;  %v1117_v12 = vld [vmem:[%s1502_s0 + $0xe0] sm:$0xff]  }
  0x30   :  { %v260_v24 = vadd.f32 %v1192_v7, %v189_v14  ;;  %v191_v25 = vmul.f32 %v888_v15, %v1178_v1  ;;  %1137 = vst [vmem:[%s1505_s3 + $0x88] sm:$0xff] %v1018_v17   ;;  %v323_v26 = vmax.f32 %v259_v18, 0.0  ;;  %v892_v28 = vunpack.c.l.bf16 %v1111_v16 }
  0x31   :  { %v192_v27 = vmul.f32 %v889_v20, %v1178_v1  ;;  %v893_v29 = vunpack.c.h.bf16 %v1111_v16  ;;  %1138 = vst [vmem:[%s1505_s3 + $0x90] sm:$0xff] %v1023_v22   ;;  %v261_v30 = vadd.f32 %v1192_v7, %v190_v23  ;;  %v896_v33 = vunpack.c.l.bf16 %v1112_v21 }
  0x32   :  { %v324_v31 = vmax.f32 %v260_v24, 0.0  ;;  %v262_v32 = vadd.f32 %v1192_v7, %v191_v25  ;;  %v1028_v35 = vpack.c.bf16 %v323_v26, %v322_v19  ;;  %v193_v37 = vmul.f32 %v892_v28, %v1178_v1 }
  0x33   :  { %v263_v36 = vadd.f32 %v1192_v7, %v192_v27  ;;  %v194_v38 = vmul.f32 %v893_v29, %v1178_v1  ;;  %v325_v39 = vmax.f32 %v261_v30, 0.0  ;;  %v897_v41 = vunpack.c.h.bf16 %v1112_v21  ;;  %v1118_v21 = vld [vmem:[%s1502_s0 + $0xe8] sm:$0xff]  }
  0x34   :  { %v326_v40 = vmax.f32 %v262_v32, 0.0  ;;  %v195_v42 = vmul.f32 %v896_v33, %v1178_v1  ;;  %1139 = vst [vmem:[%s1505_s3 + $0x98] sm:$0xff] %v1028_v35   ;;  %v264_v44 = vadd.f32 %v1192_v7, %v193_v37  ;;  %v900_v46 = vunpack.c.l.bf16 %v1113_v34 }
  0x35   :  { %v327_v43 = vmax.f32 %v263_v36, 0.0  ;;  %v265_v45 = vadd.f32 %v1192_v7, %v194_v38  ;;  %v1033_v48 = vpack.c.bf16 %v325_v39, %v324_v31  ;;  %v196_v49 = vmul.f32 %v897_v41, %v1178_v1  ;;  %v1120_v39 = vld [vmem:[%s1502_s0 + $0xf8] sm:$0xff]  }
  0x36   :  { %v266_v50 = vadd.f32 %v1192_v7, %v195_v42  ;;  %v901_v51 = vunpack.c.h.bf16 %v1113_v34  ;;  %v328_v54 = vmax.f32 %v264_v44, 0.0  ;;  %v197_v56 = vmul.f32 %v900_v46, %v1178_v1  ;;  %v1119_v34 = vld [vmem:[%s1502_s0 + $0xf0] sm:$0xff]  }
  0x37   :  { %v1038_v53 = vpack.c.bf16 %v327_v43, %v326_v40  ;;  %v329_v55 = vmax.f32 %v265_v45, 0.0  ;;  %1140 = vst [vmem:[%s1505_s3 + $0xa0] sm:$0xff] %v1033_v48   ;;  %v267_v57 = vadd.f32 %v1192_v7, %v196_v49  ;;  %v904_v60 = vunpack.c.l.bf16 %v1114_v47 }
  0x38   :  { %v330_v58 = vmax.f32 %v266_v50, 0.0  ;;  %v198_v59 = vmul.f32 %v901_v51, %v1178_v1  ;;  %v268_v63 = vadd.f32 %v1192_v7, %v197_v56  ;;  %v905_v0 = vunpack.c.h.bf16 %v1114_v47 }
  0x39   :  { %1141 = vst [vmem:[%s1505_s3 + $0xa8] sm:$0xff] %v1038_v53   ;;  %v1043_v62 = vpack.c.bf16 %v329_v55, %v328_v54  ;;  %v908_v2 = vunpack.c.l.bf16 %v1115_v52  ;;  %v331_v3 = vmax.f32 %v267_v57, 0.0  ;;  %v199_v5 = vmul.f32 %v904_v60, %v1178_v1 }
  0x3a   :  { %v269_v4 = vadd.f32 %v1192_v7, %v198_v59  ;;  %v909_v6 = vunpack.c.h.bf16 %v1115_v52  ;;  %v332_v8 = vmax.f32 %v268_v63, 0.0  ;;  %v200_v9 = vmul.f32 %v905_v0, %v1178_v1 }
  0x3b   :  { %1142 = vst [vmem:[%s1505_s3 + $0xb0] sm:$0xff] %v1043_v62   ;;  %v201_v10 = vmul.f32 %v908_v2, %v1178_v1  ;;  %v912_v11 = vunpack.c.l.bf16 %v1116_v61  ;;  %v1048_v13 = vpack.c.bf16 %v331_v3, %v330_v58  ;;  %v270_v15 = vadd.f32 %v1192_v7, %v199_v5 }
  0x3c   :  { %v333_v14 = vmax.f32 %v269_v4, 0.0  ;;  %v202_v16 = vmul.f32 %v909_v6, %v1178_v1  ;;  %v271_v17 = vadd.f32 %v1192_v7, %v200_v9  ;;  %v913_v19 = vunpack.c.h.bf16 %v1116_v61 }
  0x3d   :  { %v272_v18 = vadd.f32 %v1192_v7, %v201_v10  ;;  %v203_v20 = vmul.f32 %v912_v11, %v1178_v1  ;;  %1143 = vst [vmem:[%s1505_s3 + $0xb8] sm:$0xff] %v1048_v13   ;;  %v334_v23 = vmax.f32 %v270_v15, 0.0  ;;  %v916_v25 = vunpack.c.l.bf16 %v1117_v12 }
  0x3e   :  { %v1053_v22 = vpack.c.bf16 %v333_v14, %v332_v8  ;;  %v273_v24 = vadd.f32 %v1192_v7, %v202_v16  ;;  %v335_v26 = vmax.f32 %v271_v17, 0.0  ;;  %v204_v28 = vmul.f32 %v913_v19, %v1178_v1 }
  0x3f   :  { %v336_v27 = vmax.f32 %v272_v18, 0.0  ;;  %v274_v29 = vadd.f32 %v1192_v7, %v203_v20  ;;  %v917_v31 = vunpack.c.h.bf16 %v1117_v12  ;;  %v205_v32 = vmul.f32 %v916_v25, %v1178_v1 }
  0x40   :  { %1144 = vst [vmem:[%s1505_s3 + $0xc0] sm:$0xff] %v1053_v22   ;;  %v337_v30 = vmax.f32 %v273_v24, 0.0  ;;  %v920_v33 = vunpack.c.l.bf16 %v1118_v21  ;;  %v1058_v35 = vpack.c.bf16 %v335_v26, %v334_v23  ;;  %v275_v36 = vadd.f32 %v1192_v7, %v204_v28 }
  0x41   :  { %v338_v37 = vmax.f32 %v274_v29, 0.0  ;;  %v921_v38 = vunpack.c.h.bf16 %v1118_v21  ;;  %v206_v41 = vmul.f32 %v917_v31, %v1178_v1  ;;  %v276_v42 = vadd.f32 %v1192_v7, %v205_v32 }
  0x42   :  { %v1063_v40 = vpack.c.bf16 %v337_v30, %v336_v27  ;;  %v207_v43 = vmul.f32 %v920_v33, %v1178_v1  ;;  %1145 = vst [vmem:[%s1505_s3 + $0xc8] sm:$0xff] %v1058_v35   ;;  %v339_v44 = vmax.f32 %v275_v36, 0.0  ;;  %v924_v46 = vunpack.c.l.bf16 %v1119_v34 }
  0x43   :  { %v208_v45 = vmul.f32 %v921_v38, %v1178_v1  ;;  %v925_v47 = vunpack.c.h.bf16 %v1119_v34  ;;  %v277_v48 = vadd.f32 %v1192_v7, %v206_v41  ;;  %v340_v49 = vmax.f32 %v276_v42, 0.0 }
  0x44   :  { %1146 = vst [vmem:[%s1505_s3 + $0xd0] sm:$0xff] %v1063_v40   ;;  %v278_v50 = vadd.f32 %v1192_v7, %v207_v43  ;;  %v928_v51 = vunpack.c.l.bf16 %v1120_v39  ;;  %v1068_v52 = vpack.c.bf16 %v339_v44, %v338_v37  ;;  %v209_v54 = vmul.f32 %v924_v46, %v1178_v1 }
  0x45   :  { %v279_v53 = vadd.f32 %v1192_v7, %v208_v45  ;;  %v210_v55 = vmul.f32 %v925_v47, %v1178_v1  ;;  %v341_v56 = vmax.f32 %v277_v48, 0.0  ;;  %v929_v58 = vunpack.c.h.bf16 %v1120_v39 }
  0x46   :  { %v342_v57 = vmax.f32 %v278_v50, 0.0  ;;  %v211_v59 = vmul.f32 %v928_v51, %v1178_v1  ;;  %1147 = vst [vmem:[%s1505_s3 + $0xd8] sm:$0xff] %v1068_v52   ;;  %v280_v61 = vadd.f32 %v1192_v7, %v209_v54 }
  0x47   :  { %v343_v60 = vmax.f32 %v279_v53, 0.0  ;;  %v281_v62 = vadd.f32 %v1192_v7, %v210_v55  ;;  %v1073_v63 = vpack.c.bf16 %v341_v56, %v340_v49  ;;  %v212_v0 = vmul.f32 %v929_v58, %v1178_v1 }
  0x48   :  { %v282_v2 = vadd.f32 %v1192_v7, %v211_v59  ;;  %v344_v4 = vmax.f32 %v280_v61, 0.0 }
  0x49   :  { %v1078_v3 = vpack.c.bf16 %v343_v60, %v342_v57  ;;  %v345_v5 = vmax.f32 %v281_v62, 0.0  ;;  %1148 = vst [vmem:[%s1505_s3 + $0xe0] sm:$0xff] %v1073_v63   ;;  %v283_v6 = vadd.f32 %v1192_v7, %v212_v0 }
  0x4a   :  { %v346_v8 = vmax.f32 %v282_v2, 0.0 }
  0x4b   :  { %1149 = vst [vmem:[%s1505_s3 + $0xe8] sm:$0xff] %v1078_v3   ;;  %v1083_v9 = vpack.c.bf16 %v345_v5, %v344_v4  ;;  %v347_v10 = vmax.f32 %v283_v6, 0.0 }
  0x4d   :  { %1150 = vst [vmem:[%s1505_s3 + $0xf0] sm:$0xff] %v1083_v9   ;;  %v1088_v1 = vpack.c.bf16 %v347_v10, %v346_v8 }
  0x4f   :  { %1151 = vst [vmem:[%s1505_s3 + $0xf8] sm:$0xff] %v1088_v1  }

// kernel: double_conv.4
= control target key start
LH: loop header
LB: loop body
LE: loop exit
PB: predicated region body
PF: predicated region fallthrough
CT: control target
= control target key end

     0   :  { %vm258_vm0 = vcmask 293888   ;;  %vm355_vm1 = vcmask 1041408   ;;  %vm1170_vm2 = vcmask 1040384   ;;  %s2168_s1 = inlined_call_operand.vmem [shape: bf16[36,128], index: 1, kind: input, shape index: {}]   ;;  %s2169_s0 = inlined_call_operand.vmem [shape: bf16[512,36], index: 0, kind: input, shape index: {}]   ;;  %s2170_s2 = inlined_call_operand.vmem [shape: bf16[512,128], index: 2, kind: output, shape index: {0}]   ;;  %s2171_s3 = inlined_call_operand.vmem [shape: f32[8,128], index: 3, kind: output, shape index: {1}]  }
   0x1   :  { %v1681_v0 = vld [vmem:[%s2168_s1] sm:$0xff]   ;;  %v1682_v1 = vld [vmem:[%s2168_s1 + $0x8] sm:$0xff]   ;;  %v1683_v2 = vld [vmem:[%s2168_s1 + $0x10] ss:$0 sps:$4 sm:$0x33]  }
   0x2   :  { %1603 = vmatprep.subr.bf16.mxu0 %v1681_v0  ;;  %v1684_v3 = vld [vmem:[%s2169_s0] sm:$0xff]   ;;  %1673 = vmatprep.subr.bf16.mxu1 %v1681_v0  ;;  %v357_v4 = vsel %vm355_vm1, %v1683_v2, 0  ;;  %v1685_v5 = vld [vmem:[%s2169_s0 + $0x8] sm:$0xff]   ;;  %v1686_v6 = vld [vmem:[%s2169_s0 + $0x10] sm:$0xff]  }
   0x3   :  { %1604 = vmatpush3.bf16.msra.mxu0 %v1681_v0  ;;  %1676 = vmatpush3.bf16.msra.mxu1 %v1681_v0  ;;  %v1687_v7 = vld [vmem:[%s2169_s0 + $0x18] sm:$0xff]   ;;  %v1688_v8 = vld [vmem:[%s2169_s0 + $0x20] sm:$0xff]   ;;  %v1701_v10 = vld [vmem:[%s2169_s0 + $0x88] sm:$0xff]  }
   0x4   :  { %1605 = vmatprep.subr.bf16.mxu0 %v1682_v1  ;;  %1609 = vmatprep.mubr.msk.bf16.mxu0 %vm258_vm0, %v1684_v3  ;;  %v1700_v9 = vld [vmem:[%s2169_s0 + $0x80] sm:$0xff]   ;;  %v1702_v11 = vld [vmem:[%s2169_s0 + $0x90] sm:$0xff]   ;;  %v1689_v12 = vld [vmem:[%s2169_s0 + $0x28] sm:$0xff]  }
   0x5   :  { %1674 = vmatprep.subr.bf16.mxu1 %v1682_v1  ;;  %1641 = vmatprep.mubr.msk.bf16.mxu1 %vm258_vm0, %v1700_v9  ;;  %v1690_v13 = vld [vmem:[%s2169_s0 + $0x30] sm:$0xff]   ;;  %v1703_v14 = vld [vmem:[%s2169_s0 + $0x98] sm:$0xff]   ;;  %v1704_v15 = vld [vmem:[%s2169_s0 + $0xa0] sm:$0xff]  }
   0x6   :  { %v1691_v16 = vld [vmem:[%s2169_s0 + $0x38] sm:$0xff]   ;;  %v1705_v17 = vld [vmem:[%s2169_s0 + $0xa8] sm:$0xff]   ;;  %v1692_v18 = vld [vmem:[%s2169_s0 + $0x40] sm:$0xff]  }
   0x7   :  { %1606 = vmatpush3.bf16.msra.mxu0 %v1682_v1  ;;  %1677 = vmatpush3.bf16.msra.mxu1 %v1682_v1  ;;  %v1706_v19 = vld [vmem:[%s2169_s0 + $0xb0] sm:$0xff]   ;;  %v1693_v20 = vld [vmem:[%s2169_s0 + $0x48] sm:$0xff]   ;;  %v1707_v21 = vld [vmem:[%s2169_s0 + $0xb8] sm:$0xff]  }
   0x8   :  { %1679 = vmatprep.subr.msk.bf16.mxu0 %vm355_vm1, %v1683_v2  ;;  %1680 = vmatprep.subr.msk.bf16.mxu1 %vm355_vm1, %v1683_v2  ;;  %v1694_v22 = vld [vmem:[%s2169_s0 + $0x50] sm:$0xff]   ;;  %v1708_v23 = vld [vmem:[%s2169_s0 + $0xc0] sm:$0xff]   ;;  %v1695_v24 = vld [vmem:[%s2169_s0 + $0x58] sm:$0xff]  }
   0x9   :  { %v1709_v25 = vld [vmem:[%s2169_s0 + $0xc8] sm:$0xff]   ;;  %v1696_v26 = vld [vmem:[%s2169_s0 + $0x60] sm:$0xff]   ;;  %v1710_v27 = vld [vmem:[%s2169_s0 + $0xd0] sm:$0xff]  }
   0xa   :  { %v1697_v28 = vld [vmem:[%s2169_s0 + $0x68] sm:$0xff]   ;;  %v1711_v29 = vld [vmem:[%s2169_s0 + $0xd8] sm:$0xff]   ;;  %v1698_v30 = vld [vmem:[%s2169_s0 + $0x70] sm:$0xff]  }
   0xb   :  { %1608 = vmatpush3.bf16.msra.mxu0 %v357_v4  ;;  %1678 = vmatpush3.bf16.msra.mxu1 %v357_v4  ;;  %v1712_v31 = vld [vmem:[%s2169_s0 + $0xe0] sm:$0xff]   ;;  %v1699_v32 = vld [vmem:[%s2169_s0 + $0x78] sm:$0xff]   ;;  %v1713_v33 = vld [vmem:[%s2169_s0 + $0xe8] sm:$0xff]  }
   0xc   :  { %v1714_v34 = vld [vmem:[%s2169_s0 + $0xf0] sm:$0xff]   ;;  %v1715_v35 = vld [vmem:[%s2169_s0 + $0xf8] sm:$0xff]  }
   0xe   :  { %1610 = vmatmul.mubr.msk.bf16.vlgmr.msra.gmra.mrb[0].mxu0 %vm258_vm0, %v1685_v5  ;;  %1642 = vmatmul.mubr.msk.bf16.vlgmr.msra.gmra.mrb[0].mxu1 %vm258_vm0, %v1701_v10 }
   0xf   :  { %1613 = vmatprep.mubr.msk.bf16.mxu0 %vm258_vm0, %v1686_v6  ;;  %1645 = vmatprep.mubr.msk.bf16.mxu1 %vm258_vm0, %v1702_v11 }
  0x16   :  { %1614 = vmatmul.mubr.msk.bf16.gmra.mrb[4].mxu0 %vm258_vm0, %v1687_v7  ;;  %1646 = vmatmul.mubr.msk.bf16.gmra.mrb[4].mxu1 %vm258_vm0, %v1703_v14 }
  0x17   :  { %1617 = vmatprep.mubr.msk.bf16.mxu0 %vm258_vm0, %v1688_v8  ;;  %1649 = vmatprep.mubr.msk.bf16.mxu1 %vm258_vm0, %v1704_v15 }
  0x1e   :  { %1618 = vmatmul.mubr.msk.bf16.gmra.mrb[8].mxu0 %vm258_vm0, %v1689_v12  ;;  %1650 = vmatmul.mubr.msk.bf16.gmra.mrb[8].mxu1 %vm258_vm0, %v1705_v17 }
  0x1f   :  { %1621 = vmatprep.mubr.msk.bf16.mxu0 %vm258_vm0, %v1690_v13  ;;  %1653 = vmatprep.mubr.msk.bf16.mxu1 %vm258_vm0, %v1706_v19 }
  0x26   :  { %1622 = vmatmul.mubr.msk.bf16.gmra.mrb[12].mxu0 %vm258_vm0, %v1691_v16  ;;  %1654 = vmatmul.mubr.msk.bf16.gmra.mrb[12].mxu1 %vm258_vm0, %v1707_v21 }
  0x27   :  { %1625 = vmatprep.mubr.msk.bf16.mxu0 %vm258_vm0, %v1692_v18  ;;  %1657 = vmatprep.mubr.msk.bf16.mxu1 %vm258_vm0, %v1708_v23 }
  0x2e   :  { %1626 = vmatmul.mubr.msk.bf16.gmra.mrb[16].mxu0 %vm258_vm0, %v1693_v20  ;;  %1658 = vmatmul.mubr.msk.bf16.gmra.mrb[16].mxu1 %vm258_vm0, %v1709_v25 }
  0x2f   :  { %1629 = vmatprep.mubr.msk.bf16.mxu0 %vm258_vm0, %v1694_v22  ;;  %1661 = vmatprep.mubr.msk.bf16.mxu1 %vm258_vm0, %v1710_v27 }
  0x36   :  { %1630 = vmatmul.mubr.msk.bf16.gmra.mrb[20].mxu0 %vm258_vm0, %v1695_v24  ;;  %1662 = vmatmul.mubr.msk.bf16.gmra.mrb[20].mxu1 %vm258_vm0, %v1711_v29 }
  0x37   :  { %1633 = vmatprep.mubr.msk.bf16.mxu0 %vm258_vm0, %v1696_v26  ;;  %1665 = vmatprep.mubr.msk.bf16.mxu1 %vm258_vm0, %v1712_v31 }
  0x3e   :  { %1634 = vmatmul.mubr.msk.bf16.gmra.mrb[24].mxu0 %vm258_vm0, %v1697_v28  ;;  %1666 = vmatmul.mubr.msk.bf16.gmra.mrb[24].mxu1 %vm258_vm0, %v1713_v33 }
  0x3f   :  { %1637 = vmatprep.mubr.msk.bf16.mxu0 %vm258_vm0, %v1698_v30  ;;  %1669 = vmatprep.mubr.msk.bf16.mxu1 %vm258_vm0, %v1714_v34 }
  0x46   :  { %1638 = vmatmul.mubr.msk.bf16.gmra.mrb[28].mxu0 %vm258_vm0, %v1699_v32  ;;  %1670 = vmatmul.mubr.msk.bf16.gmra.mrb[28].mxu1 %vm258_vm0, %v1715_v35 }
  0xe1   :  { %v1611_v36 = vpop.f32.mrb[0].mxu0  ;;  %v1882_v52 = vpop.f32.mrb[0].mxu1 }
  0xe2   :  { %v393_v37 = vpop.f32.mrb[1].mxu0  ;;  %v1039_v45 = vmul.f32 %v1611_v36, %v1611_v36  ;;  %v1884_v54 = vpop.f32.mrb[1].mxu1 }
  0xe3   :  { %v1612_v38 = vpop.f32.mrb[2].mxu0  ;;  %v1037_v41 = vmul.f32 %v393_v37, %v393_v37  ;;  %v1886_v59 = vpop.f32.mrb[2].mxu1 }
  0xe4   :  { %v1385_v39 = vpack.c.bf16 %v1612_v38, %v1611_v36  ;;  %v396_v40 = vpop.f32.mrb[3].mxu0  ;;  %v1040_v48 = vmul.f32 %v1612_v38, %v1612_v38  ;;  %v1465_v62 = vpack.c.bf16 %v1886_v59, %v1882_v52  ;;  %v1890_v63 = vpop.f32.mrb[3].mxu1 }
  0xe5   :  { %v1380_v42 = vpack.c.bf16 %v396_v40, %v393_v37  ;;  %v968_v43 = vadd.f32 %v396_v40, %v393_v37  ;;  %v1038_v44 = vmul.f32 %v396_v40, %v396_v40  ;;  %v1460_v4 = vpack.c.bf16 %v1890_v63, %v1884_v54 }
  0xe6   :  { %1537 = vst [vmem:[%s2170_s2 + $0x8] sm:$0xff] %v1385_v39   ;;  %1553 = vst [vmem:[%s2170_s2 + $0x88] sm:$0xff] %v1465_v62  }
  0xe7   :  { %1381 = vst [vmem:[%s2170_s2] sm:$0xff] %v1380_v42   ;;  %v969_v46 = vadd.f32 %v1611_v36, %v968_v43  ;;  %v1101_v47 = vadd.f32 %v1038_v44, %v1037_v41  ;;  %1552 = vst [vmem:[%s2170_s2 + $0x80] sm:$0xff] %v1460_v4  }
  0xe9   :  { %v1102_v49 = vadd.f32 %v1101_v47, %v1039_v45  ;;  %v1615_v50 = vpop.f32.mrb[4].mxu0  ;;  %v970_v51 = vadd.f32 %v1612_v38, %v969_v46  ;;  %v1906_v12 = vpop.f32.mrb[4].mxu1 }
  0xea   :  { %v409_v53 = vpop.f32.mrb[5].mxu0  ;;  %v1043_v5 = vmul.f32 %v1615_v50, %v1615_v50  ;;  %v1908_v14 = vpop.f32.mrb[5].mxu1 }
  0xeb   :  { %v971_v55 = vadd.f32 %v970_v51, %v409_v53  ;;  %v1041_v56 = vmul.f32 %v409_v53, %v409_v53  ;;  %v1103_v57 = vadd.f32 %v1102_v49, %v1040_v48  ;;  %v1616_v58 = vpop.f32.mrb[6].mxu0  ;;  %v1910_v19 = vpop.f32.mrb[6].mxu1 }
  0xec   :  { %v1395_v60 = vpack.c.bf16 %v1616_v58, %v1615_v50  ;;  %v412_v61 = vpop.f32.mrb[7].mxu0  ;;  %v1044_v8 = vmul.f32 %v1616_v58, %v1616_v58  ;;  %v1475_v22 = vpack.c.bf16 %v1910_v19, %v1906_v12  ;;  %v1914_v23 = vpop.f32.mrb[7].mxu1 }
  0xed   :  { %v1104_v0 = vadd.f32 %v1103_v57, %v1041_v56  ;;  %v1390_v1 = vpack.c.bf16 %v412_v61, %v409_v53  ;;  %v972_v2 = vadd.f32 %v971_v55, %v412_v61  ;;  %v1042_v3 = vmul.f32 %v412_v61, %v412_v61 }
  0xee   :  { %1539 = vst [vmem:[%s2170_s2 + $0x18] sm:$0xff] %v1395_v60   ;;  %1555 = vst [vmem:[%s2170_s2 + $0x98] sm:$0xff] %v1475_v22   ;;  %v1470_v28 = vpack.c.bf16 %v1914_v23, %v1908_v14 }
  0xef   :  { %1538 = vst [vmem:[%s2170_s2 + $0x10] sm:$0xff] %v1390_v1   ;;  %v973_v6 = vadd.f32 %v1615_v50, %v972_v2  ;;  %v1105_v7 = vadd.f32 %v1104_v0, %v1042_v3 }
  0xf0   :  { %1554 = vst [vmem:[%s2170_s2 + $0x90] sm:$0xff] %v1470_v28  }
  0xf1   :  { %v1106_v9 = vadd.f32 %v1105_v7, %v1043_v5  ;;  %v1619_v10 = vpop.f32.mrb[8].mxu0  ;;  %v974_v11 = vadd.f32 %v1616_v58, %v973_v6  ;;  %v1930_v36 = vpop.f32.mrb[8].mxu1 }
  0xf2   :  { %v425_v13 = vpop.f32.mrb[9].mxu0  ;;  %v1047_v29 = vmul.f32 %v1619_v10, %v1619_v10  ;;  %v1932_v38 = vpop.f32.mrb[9].mxu1 }
  0xf3   :  { %v975_v15 = vadd.f32 %v974_v11, %v425_v13  ;;  %v1045_v16 = vmul.f32 %v425_v13, %v425_v13  ;;  %v1107_v17 = vadd.f32 %v1106_v9, %v1044_v8  ;;  %v1620_v18 = vpop.f32.mrb[10].mxu0  ;;  %v1934_v43 = vpop.f32.mrb[10].mxu1 }
  0xf4   :  { %v1405_v20 = vpack.c.bf16 %v1620_v18, %v1619_v10  ;;  %v428_v21 = vpop.f32.mrb[11].mxu0  ;;  %v1048_v32 = vmul.f32 %v1620_v18, %v1620_v18  ;;  %v1485_v46 = vpack.c.bf16 %v1934_v43, %v1930_v36  ;;  %v1938_v47 = vpop.f32.mrb[11].mxu1 }
  0xf5   :  { %v1108_v24 = vadd.f32 %v1107_v17, %v1045_v16  ;;  %v1400_v25 = vpack.c.bf16 %v428_v21, %v425_v13  ;;  %v976_v26 = vadd.f32 %v975_v15, %v428_v21  ;;  %v1046_v27 = vmul.f32 %v428_v21, %v428_v21 }
  0xf6   :  { %1541 = vst [vmem:[%s2170_s2 + $0x28] sm:$0xff] %v1405_v20   ;;  %1557 = vst [vmem:[%s2170_s2 + $0xa8] sm:$0xff] %v1485_v46   ;;  %v1480_v53 = vpack.c.bf16 %v1938_v47, %v1932_v38 }
  0xf7   :  { %1540 = vst [vmem:[%s2170_s2 + $0x20] sm:$0xff] %v1400_v25   ;;  %v977_v30 = vadd.f32 %v1619_v10, %v976_v26  ;;  %v1109_v31 = vadd.f32 %v1108_v24, %v1046_v27 }
  0xf8   :  { %1556 = vst [vmem:[%s2170_s2 + $0xa0] sm:$0xff] %v1480_v53  }
  0xf9   :  { %v1110_v33 = vadd.f32 %v1109_v31, %v1047_v29  ;;  %v1623_v34 = vpop.f32.mrb[12].mxu0  ;;  %v978_v35 = vadd.f32 %v1620_v18, %v977_v30  ;;  %v1954_v0 = vpop.f32.mrb[12].mxu1 }
  0xfa   :  { %v441_v37 = vpop.f32.mrb[13].mxu0  ;;  %v1051_v55 = vmul.f32 %v1623_v34, %v1623_v34  ;;  %v1956_v2 = vpop.f32.mrb[13].mxu1 }
  0xfb   :  { %v979_v39 = vadd.f32 %v978_v35, %v441_v37  ;;  %v1049_v40 = vmul.f32 %v441_v37, %v441_v37  ;;  %v1111_v41 = vadd.f32 %v1110_v33, %v1048_v32  ;;  %v1624_v42 = vpop.f32.mrb[14].mxu0  ;;  %v1958_v7 = vpop.f32.mrb[14].mxu1 }
  0xfc   :  { %v1415_v44 = vpack.c.bf16 %v1624_v42, %v1623_v34  ;;  %v444_v45 = vpop.f32.mrb[15].mxu0  ;;  %v1052_v58 = vmul.f32 %v1624_v42, %v1624_v42  ;;  %v1495_v10 = vpack.c.bf16 %v1958_v7, %v1954_v0  ;;  %v1962_v11 = vpop.f32.mrb[15].mxu1 }
  0xfd   :  { %v1112_v48 = vadd.f32 %v1111_v41, %v1049_v40  ;;  %v1410_v49 = vpack.c.bf16 %v444_v45, %v441_v37  ;;  %v980_v50 = vadd.f32 %v979_v39, %v444_v45  ;;  %v1050_v51 = vmul.f32 %v444_v45, %v444_v45 }
  0xfe   :  { %1543 = vst [vmem:[%s2170_s2 + $0x38] sm:$0xff] %v1415_v44   ;;  %1559 = vst [vmem:[%s2170_s2 + $0xb8] sm:$0xff] %v1495_v10   ;;  %v1490_v18 = vpack.c.bf16 %v1962_v11, %v1956_v2 }
  0xff   :  { %1542 = vst [vmem:[%s2170_s2 + $0x30] sm:$0xff] %v1410_v49   ;;  %v981_v56 = vadd.f32 %v1623_v34, %v980_v50  ;;  %v1113_v57 = vadd.f32 %v1112_v48, %v1050_v51 }
 0x100   :  { %1558 = vst [vmem:[%s2170_s2 + $0xb0] sm:$0xff] %v1490_v18  }
 0x101   :  { %v1114_v60 = vadd.f32 %v1113_v57, %v1051_v55  ;;  %v1627_v61 = vpop.f32.mrb[16].mxu0  ;;  %v982_v62 = vadd.f32 %v1624_v42, %v981_v56  ;;  %v1978_v28 = vpop.f32.mrb[16].mxu1 }
 0x102   :  { %v457_v1 = vpop.f32.mrb[17].mxu0  ;;  %v1055_v20 = vmul.f32 %v1627_v61, %v1627_v61  ;;  %v1980_v30 = vpop.f32.mrb[17].mxu1 }
 0x103   :  { %v983_v3 = vadd.f32 %v982_v62, %v457_v1  ;;  %v1053_v4 = vmul.f32 %v457_v1, %v457_v1  ;;  %v1115_v5 = vadd.f32 %v1114_v60, %v1052_v58  ;;  %v1628_v6 = vpop.f32.mrb[18].mxu0  ;;  %v1982_v35 = vpop.f32.mrb[18].mxu1 }
 0x104   :  { %v1425_v8 = vpack.c.bf16 %v1628_v6, %v1627_v61  ;;  %v460_v9 = vpop.f32.mrb[19].mxu0  ;;  %v1056_v24 = vmul.f32 %v1628_v6, %v1628_v6  ;;  %v1505_v40 = vpack.c.bf16 %v1982_v35, %v1978_v28  ;;  %v1986_v41 = vpop.f32.mrb[19].mxu1 }
 0x105   :  { %v1116_v13 = vadd.f32 %v1115_v5, %v1053_v4  ;;  %v1420_v15 = vpack.c.bf16 %v460_v9, %v457_v1  ;;  %v984_v16 = vadd.f32 %v983_v3, %v460_v9  ;;  %v1054_v17 = vmul.f32 %v460_v9, %v460_v9 }
 0x106   :  { %1545 = vst [vmem:[%s2170_s2 + $0x48] sm:$0xff] %v1425_v8   ;;  %1561 = vst [vmem:[%s2170_s2 + $0xc8] sm:$0xff] %v1505_v40   ;;  %v1500_v48 = vpack.c.bf16 %v1986_v41, %v1980_v30 }
 0x107   :  { %1544 = vst [vmem:[%s2170_s2 + $0x40] sm:$0xff] %v1420_v15   ;;  %v985_v21 = vadd.f32 %v1627_v61, %v984_v16  ;;  %v1117_v22 = vadd.f32 %v1116_v13, %v1054_v17 }
 0x108   :  { %1560 = vst [vmem:[%s2170_s2 + $0xc0] sm:$0xff] %v1500_v48  }
 0x109   :  { %v1118_v25 = vadd.f32 %v1117_v22, %v1055_v20  ;;  %v1631_v26 = vpop.f32.mrb[20].mxu0  ;;  %v986_v27 = vadd.f32 %v1628_v6, %v985_v21  ;;  %v2002_v58 = vpop.f32.mrb[20].mxu1 }
 0x10a   :  { %v473_v29 = vpop.f32.mrb[21].mxu0  ;;  %v1059_v49 = vmul.f32 %v1631_v26, %v1631_v26  ;;  %v2004_v61 = vpop.f32.mrb[21].mxu1 }
 0x10b   :  { %v987_v31 = vadd.f32 %v986_v27, %v473_v29  ;;  %v1057_v32 = vmul.f32 %v473_v29, %v473_v29  ;;  %v1119_v33 = vadd.f32 %v1118_v25, %v1056_v24  ;;  %v1632_v34 = vpop.f32.mrb[22].mxu0  ;;  %v2006_v5 = vpop.f32.mrb[22].mxu1 }
 0x10c   :  { %v1435_v37 = vpack.c.bf16 %v1632_v34, %v1631_v26  ;;  %v476_v39 = vpop.f32.mrb[23].mxu0  ;;  %v1060_v53 = vmul.f32 %v1632_v34, %v1632_v34  ;;  %v1515_v9 = vpack.c.bf16 %v2006_v5, %v2002_v58  ;;  %v2010_v10 = vpop.f32.mrb[23].mxu1 }
 0x10d   :  { %v1120_v42 = vadd.f32 %v1119_v33, %v1057_v32  ;;  %v1430_v44 = vpack.c.bf16 %v476_v39, %v473_v29  ;;  %v988_v45 = vadd.f32 %v987_v31, %v476_v39  ;;  %v1058_v46 = vmul.f32 %v476_v39, %v476_v39 }
 0x10e   :  { %1547 = vst [vmem:[%s2170_s2 + $0x58] sm:$0xff] %v1435_v37   ;;  %1563 = vst [vmem:[%s2170_s2 + $0xd8] sm:$0xff] %v1515_v9   ;;  %v1510_v18 = vpack.c.bf16 %v2010_v10, %v2004_v61 }
 0x10f   :  { %1546 = vst [vmem:[%s2170_s2 + $0x50] sm:$0xff] %v1430_v44   ;;  %v989_v50 = vadd.f32 %v1631_v26, %v988_v45  ;;  %v1121_v51 = vadd.f32 %v1120_v42, %v1058_v46 }
 0x110   :  { %1562 = vst [vmem:[%s2170_s2 + $0xd0] sm:$0xff] %v1510_v18  }
 0x111   :  { %v1122_v55 = vadd.f32 %v1121_v51, %v1059_v49  ;;  %v1635_v56 = vpop.f32.mrb[24].mxu0  ;;  %v990_v57 = vadd.f32 %v1632_v34, %v989_v50  ;;  %v2026_v29 = vpop.f32.mrb[24].mxu1 }
 0x112   :  { %v489_v60 = vpop.f32.mrb[25].mxu0  ;;  %v1063_v20 = vmul.f32 %v1635_v56, %v1635_v56  ;;  %v2028_v32 = vpop.f32.mrb[25].mxu1 }
 0x113   :  { %v991_v62 = vadd.f32 %v990_v57, %v489_v60  ;;  %v1061_v1 = vmul.f32 %v489_v60, %v489_v60  ;;  %v1123_v3 = vadd.f32 %v1122_v55, %v1060_v53  ;;  %v1636_v4 = vpop.f32.mrb[26].mxu0  ;;  %v2030_v40 = vpop.f32.mrb[26].mxu1 }
 0x114   :  { %v1445_v6 = vpack.c.bf16 %v1636_v4, %v1635_v56  ;;  %v492_v8 = vpop.f32.mrb[27].mxu0  ;;  %v1064_v24 = vmul.f32 %v1636_v4, %v1636_v4  ;;  %v1525_v45 = vpack.c.bf16 %v2030_v40, %v2026_v29  ;;  %v2034_v46 = vpop.f32.mrb[27].mxu1 }
 0x115   :  { %v1124_v13 = vadd.f32 %v1123_v3, %v1061_v1  ;;  %v1440_v15 = vpack.c.bf16 %v492_v8, %v489_v60  ;;  %v992_v16 = vadd.f32 %v991_v62, %v492_v8  ;;  %v1062_v17 = vmul.f32 %v492_v8, %v492_v8 }
 0x116   :  { %1549 = vst [vmem:[%s2170_s2 + $0x68] sm:$0xff] %v1445_v6   ;;  %1565 = vst [vmem:[%s2170_s2 + $0xe8] sm:$0xff] %v1525_v45   ;;  %v1520_v53 = vpack.c.bf16 %v2034_v46, %v2028_v32  ;;  %v1069_v3 = vmul.f32 %v1884_v54, %v1884_v54 }
 0x117   :  { %1548 = vst [vmem:[%s2170_s2 + $0x60] sm:$0xff] %v1440_v15   ;;  %v993_v21 = vadd.f32 %v1635_v56, %v992_v16  ;;  %v1125_v22 = vadd.f32 %v1124_v13, %v1062_v17 }
 0x118   :  { %1564 = vst [vmem:[%s2170_s2 + $0xe0] sm:$0xff] %v1520_v53   ;;  %v1078_v53 = vmul.f32 %v1938_v47, %v1938_v47 }
 0x119   :  { %v1126_v25 = vadd.f32 %v1125_v22, %v1063_v20  ;;  %v1639_v26 = vpop.f32.mrb[28].mxu0  ;;  %v994_v27 = vadd.f32 %v1636_v4, %v993_v21  ;;  %v2052_v4 = vpop.f32.mrb[28].mxu1  ;;  %v1070_v20 = vmul.f32 %v1890_v63, %v1890_v63 }
 0x11a   :  { %v505_v31 = vpop.f32.mrb[29].mxu0  ;;  %v1067_v55 = vmul.f32 %v1639_v26, %v1639_v26  ;;  %v2054_v6 = vpop.f32.mrb[29].mxu1 }
 0x11b   :  { %v995_v33 = vadd.f32 %v994_v27, %v505_v31  ;;  %v1065_v34 = vmul.f32 %v505_v31, %v505_v31  ;;  %v1127_v37 = vadd.f32 %v1126_v25, %v1064_v24  ;;  %v1640_v39 = vpop.f32.mrb[30].mxu0  ;;  %v2057_v13 = vpop.f32.mrb[30].mxu1  ;;  %v1073_v27 = vmul.f32 %v1908_v14, %v1908_v14 }
 0x11c   :  { %v1455_v42 = vpack.c.bf16 %v1640_v39, %v1639_v26  ;;  %v508_v44 = vpop.f32.mrb[31].mxu0  ;;  %v1068_v60 = vmul.f32 %v1640_v39, %v1640_v39  ;;  %v1535_v15 = vpack.c.bf16 %v2057_v13, %v2052_v4  ;;  %v2061_v16 = vpop.f32.mrb[31].mxu1 }
 0x11d   :  { %v1128_v48 = vadd.f32 %v1127_v37, %v1065_v34  ;;  %v1450_v49 = vpack.c.bf16 %v508_v44, %v505_v31  ;;  %v996_v50 = vadd.f32 %v995_v33, %v508_v44  ;;  %v1066_v51 = vmul.f32 %v508_v44, %v508_v44 }
 0x11e   :  { %1551 = vst [vmem:[%s2170_s2 + $0x78] sm:$0xff] %v1455_v42   ;;  %v1530_v21 = vpack.c.bf16 %v2061_v16, %v2054_v6  ;;  %1567 = vst [vmem:[%s2170_s2 + $0xf8] sm:$0xff] %v1535_v15   ;;  %v1074_v37 = vmul.f32 %v1914_v23, %v1914_v23 }
 0x11f   :  { %1550 = vst [vmem:[%s2170_s2 + $0x70] sm:$0xff] %v1450_v49   ;;  %v997_v56 = vadd.f32 %v1639_v26, %v996_v50  ;;  %v1129_v57 = vadd.f32 %v1128_v48, %v1066_v51 }
 0x120   :  { %1566 = vst [vmem:[%s2170_s2 + $0xf0] sm:$0xff] %v1530_v21  }
 0x121   :  { %v1130_v62 = vadd.f32 %v1129_v57, %v1067_v55  ;;  %v998_v1 = vadd.f32 %v1640_v39, %v997_v56  ;;  %v1075_v39 = vmul.f32 %v1906_v12, %v1906_v12 }
 0x123   :  { %v999_v8 = vadd.f32 %v998_v1, %v1884_v54  ;;  %v1131_v9 = vadd.f32 %v1130_v62, %v1068_v60  ;;  %v1071_v54 = vmul.f32 %v1882_v52, %v1882_v52 }
 0x125   :  { %v1132_v17 = vadd.f32 %v1131_v9, %v1069_v3  ;;  %v1000_v18 = vadd.f32 %v999_v8, %v1890_v63  ;;  %v1072_v63 = vmul.f32 %v1886_v59, %v1886_v59  ;;  %v1082_v8 = vmul.f32 %v1962_v11, %v1962_v11 }
 0x127   :  { %v1001_v22 = vadd.f32 %v1882_v52, %v1000_v18  ;;  %v1133_v24 = vadd.f32 %v1132_v17, %v1070_v20 }
 0x129   :  { %v1134_v25 = vadd.f32 %v1133_v24, %v1071_v54  ;;  %v1002_v26 = vadd.f32 %v1886_v59, %v1001_v22  ;;  %v1076_v59 = vmul.f32 %v1910_v19, %v1910_v19  ;;  %v1086_v22 = vmul.f32 %v1986_v41, %v1986_v41 }
 0x12b   :  { %v1003_v31 = vadd.f32 %v1002_v26, %v1908_v14  ;;  %v1135_v33 = vadd.f32 %v1134_v25, %v1072_v63  ;;  %v1077_v14 = vmul.f32 %v1932_v38, %v1932_v38 }
 0x12d   :  { %v1136_v34 = vadd.f32 %v1135_v33, %v1073_v27  ;;  %v1004_v52 = vadd.f32 %v1003_v31, %v1914_v23 }
 0x12f   :  { %v1005_v42 = vadd.f32 %v1906_v12, %v1004_v52  ;;  %v1137_v44 = vadd.f32 %v1136_v34, %v1074_v37  ;;  %v1079_v12 = vmul.f32 %v1930_v36, %v1930_v36  ;;  %v1090_v34 = vmul.f32 %v2010_v10, %v2010_v10 }
 0x131   :  { %v1138_v45 = vadd.f32 %v1137_v44, %v1075_v39  ;;  %v1006_v48 = vadd.f32 %v1910_v19, %v1005_v42  ;;  %v1080_v19 = vmul.f32 %v1934_v43, %v1934_v43 }
 0x133   :  { %v1007_v49 = vadd.f32 %v1006_v48, %v1932_v38  ;;  %v1139_v50 = vadd.f32 %v1138_v45, %v1076_v59  ;;  %v1081_v38 = vmul.f32 %v1956_v2, %v1956_v2  ;;  %v1094_v48 = vmul.f32 %v2034_v46, %v2034_v46 }
 0x135   :  { %v1140_v51 = vadd.f32 %v1139_v50, %v1077_v14  ;;  %v1008_v23 = vadd.f32 %v1007_v49, %v1938_v47 }
 0x137   :  { %v1009_v55 = vadd.f32 %v1930_v36, %v1008_v23  ;;  %v1141_v56 = vadd.f32 %v1140_v51, %v1078_v53  ;;  %v1083_v36 = vmul.f32 %v1954_v0, %v1954_v0 }
 0x139   :  { %v1142_v57 = vadd.f32 %v1141_v56, %v1079_v12  ;;  %v1010_v60 = vadd.f32 %v1934_v43, %v1009_v55  ;;  %v1084_v43 = vmul.f32 %v1958_v7, %v1958_v7  ;;  %v1098_v55 = vmul.f32 %v2061_v16, %v2061_v16 }
 0x13b   :  { %v1011_v62 = vadd.f32 %v1010_v60, %v1956_v2  ;;  %v1143_v1 = vadd.f32 %v1142_v57, %v1080_v19  ;;  %v1085_v2 = vmul.f32 %v1980_v30, %v1980_v30 }
 0x13d   :  { %v1144_v3 = vadd.f32 %v1143_v1, %v1081_v38  ;;  %v1012_v47 = vadd.f32 %v1011_v62, %v1962_v11 }
 0x13f   :  { %v1013_v9 = vadd.f32 %v1954_v0, %v1012_v47  ;;  %v1145_v15 = vadd.f32 %v1144_v3, %v1082_v8  ;;  %v1087_v0 = vmul.f32 %v1978_v28, %v1978_v28 }
 0x141   :  { %v1146_v17 = vadd.f32 %v1145_v15, %v1083_v36  ;;  %v1014_v18 = vadd.f32 %v1958_v7, %v1013_v9  ;;  %v1088_v7 = vmul.f32 %v1982_v35, %v1982_v35 }
 0x143   :  { %v1015_v20 = vadd.f32 %v1014_v18, %v1980_v30  ;;  %v1147_v21 = vadd.f32 %v1146_v17, %v1084_v43  ;;  %v1089_v30 = vmul.f32 %v2004_v61, %v2004_v61 }
 0x145   :  { %v1148_v54 = vadd.f32 %v1147_v21, %v1085_v2  ;;  %v1016_v11 = vadd.f32 %v1015_v20, %v1986_v41 }
 0x147   :  { %v1017_v24 = vadd.f32 %v1978_v28, %v1016_v11  ;;  %v1149_v63 = vadd.f32 %v1148_v54, %v1086_v22  ;;  %v1091_v28 = vmul.f32 %v2002_v58, %v2002_v58 }
 0x149   :  { %v1150_v25 = vadd.f32 %v1149_v63, %v1087_v0  ;;  %v1018_v26 = vadd.f32 %v1982_v35, %v1017_v24  ;;  %v1092_v35 = vmul.f32 %v2006_v5, %v2006_v5 }
 0x14b   :  { %v1019_v27 = vadd.f32 %v1018_v26, %v2004_v61  ;;  %v1151_v31 = vadd.f32 %v1150_v25, %v1088_v7  ;;  %v1093_v61 = vmul.f32 %v2028_v32, %v2028_v32 }
 0x14d   :  { %v1152_v33 = vadd.f32 %v1151_v31, %v1089_v30  ;;  %v1020_v41 = vadd.f32 %v1019_v27, %v2010_v10 }
 0x14f   :  { %v1021_v52 = vadd.f32 %v2002_v58, %v1020_v41  ;;  %v1153_v37 = vadd.f32 %v1152_v33, %v1090_v34  ;;  %v1095_v58 = vmul.f32 %v2026_v29, %v2026_v29 }
 0x151   :  { %v1154_v39 = vadd.f32 %v1153_v37, %v1091_v28  ;;  %v1022_v42 = vadd.f32 %v2006_v5, %v1021_v52  ;;  %v1096_v5 = vmul.f32 %v2030_v40, %v2030_v40 }
 0x153   :  { %v1023_v44 = vadd.f32 %v1022_v42, %v2028_v32  ;;  %v1155_v59 = vadd.f32 %v1154_v39, %v1092_v35  ;;  %v1097_v32 = vmul.f32 %v2054_v6, %v2054_v6 }
 0x155   :  { %v1156_v45 = vadd.f32 %v1155_v59, %v1093_v61  ;;  %v1024_v10 = vadd.f32 %v1023_v44, %v2034_v46 }
 0x157   :  { %v1025_v14 = vadd.f32 %v2026_v29, %v1024_v10  ;;  %v1157_v49 = vadd.f32 %v1156_v45, %v1094_v48  ;;  %v1099_v29 = vmul.f32 %v2052_v4, %v2052_v4 }
 0x159   :  { %v1158_v50 = vadd.f32 %v1157_v49, %v1095_v58  ;;  %v1026_v51 = vadd.f32 %v2030_v40, %v1025_v14  ;;  %v1100_v40 = vmul.f32 %v2057_v13, %v2057_v13 }
 0x15b   :  { %v1027_v23 = vadd.f32 %v1026_v51, %v2054_v6  ;;  %v1159_v53 = vadd.f32 %v1158_v50, %v1096_v5 }
 0x15d   :  { %v1160_v12 = vadd.f32 %v1159_v53, %v1097_v32  ;;  %v1028_v46 = vadd.f32 %v1027_v23, %v2061_v16 }
 0x15f   :  { %v1029_v56 = vadd.f32 %v2052_v4, %v1028_v46  ;;  %v1161_v19 = vadd.f32 %v1160_v12, %v1098_v55 }
 0x161   :  { %v1030_v57 = vadd.f32 %v2057_v13, %v1029_v56  ;;  %v1162_v60 = vadd.f32 %v1161_v19, %v1099_v29 }
 0x163   :  { %v1031_v6 = vrot.slane %v1030_v57, 4  ;;  %v1163_v38 = vadd.f32 %v1162_v60, %v1100_v40 }
 0x165   :  { %v1032_v62 = vadd.f32 %v1031_v6, %v1030_v57  ;;  %v1164_v1 = vrot.slane %v1163_v38, 4 }
 0x167   :  { %v1033_v3 = vrot.slane %v1032_v62, 2  ;;  %v1165_v47 = vadd.f32 %v1164_v1, %v1163_v38 }
 0x169   :  { %v1034_v8 = vadd.f32 %v1033_v3, %v1032_v62  ;;  %v1166_v16 = vrot.slane %v1165_v47, 2 }
 0x16b   :  { %v1035_v36 = vrot.slane %v1034_v8, 1  ;;  %v1167_v9 = vadd.f32 %v1166_v16, %v1165_v47 }
 0x16d   :  { %v1168_v15 = vrot.slane %v1167_v9, 1  ;;  %v1036_v4 = vadd.f32 %v1035_v36, %v1034_v8 }
 0x16f   :  { %v1169_v43 = vadd.f32 %v1168_v15, %v1167_v9 }
 0x171   :  { %v1171_v17 = vsel %vm1170_vm2, %v1036_v4, %v1169_v43 }
 0x172   :  { %v1172_v18 = vsel %vm355_vm1, %v1171_v17, 0.0 }
 0x173   :  { %1173 = vst [vmem:[%s2171_s3] sm:$0xff] %v1172_v18 }

// kernel: double_conv.7
= control target key start
LH: loop header
LB: loop body
LE: loop exit
PB: predicated region body
PF: predicated region fallthrough
CT: control target
= control target key end

     0   :  { %s1023_s0 = inlined_call_operand.vmem [shape: bf16[512,128], index: 0, kind: input, shape index: {}]   ;;  %s1024_s1 = inlined_call_operand.vmem [shape: f32[1,128], index: 1, kind: input, shape index: {}]   ;;  %s1025_s2 = inlined_call_operand.vmem [shape: f32[1,128], index: 2, kind: input, shape index: {}]   ;;  %s1026_s3 = inlined_call_operand.vmem [shape: f32[512,128], index: 3, kind: output, shape index: {}]  }
   0x1   :  { %v419_v0 = vld [vmem:[%s1023_s0] sm:$0xff]   ;;  %v546_v4 = vld [vmem:[%s1023_s0 + $0x8] sm:$0xff]   ;;  %v547_v5 = vld [vmem:[%s1023_s0 + $0x10] sm:$0xff]  }
   0x2   :  { %v603_v1 = vld [vmem:[%s1024_s1] ss:$0 sm:$0xff]  ;;  %v420_v2 = vunpack.c.l.bf16 %v419_v0  ;;  %v421_v3 = vunpack.c.h.bf16 %v419_v0  ;;  %v548_v6 = vld [vmem:[%s1023_s0 + $0x18] sm:$0xff]   ;;  %v424_v8 = vunpack.c.l.bf16 %v546_v4  ;;  %v425_v9 = vunpack.c.h.bf16 %v546_v4  ;;  %v550_v33 = vld [vmem:[%s1023_s0 + $0x28] sm:$0xff]  }
   0x3   :  { %v617_v7 = vld [vmem:[%s1025_s2] ss:$0 sm:$0xff]  ;;  %v428_v10 = vunpack.c.l.bf16 %v547_v5  ;;  %v429_v11 = vunpack.c.h.bf16 %v547_v5  ;;  %v432_v14 = vunpack.c.l.bf16 %v548_v6  ;;  %v433_v15 = vunpack.c.h.bf16 %v548_v6  ;;  %v551_v34 = vld [vmem:[%s1023_s0 + $0x30] sm:$0xff]   ;;  %v552_v39 = vld [vmem:[%s1023_s0 + $0x38] sm:$0xff]  }
   0x4   :  { %v149_v12 = vmul.f32 %v420_v2, %v603_v1  ;;  %v150_v13 = vmul.f32 %v421_v3, %v603_v1  ;;  %v151_v16 = vmul.f32 %v424_v8, %v603_v1  ;;  %v152_v17 = vmul.f32 %v425_v9, %v603_v1  ;;  %v549_v28 = vld [vmem:[%s1023_s0 + $0x20] sm:$0xff]   ;;  %v554_v6 = vld [vmem:[%s1023_s0 + $0x48] sm:$0xff]   ;;  %v555_v8 = vld [vmem:[%s1023_s0 + $0x50] sm:$0xff]  }
   0x5   :  { %v153_v18 = vmul.f32 %v428_v10, %v603_v1  ;;  %v154_v19 = vmul.f32 %v429_v11, %v603_v1  ;;  %v155_v22 = vmul.f32 %v432_v14, %v603_v1  ;;  %v156_v23 = vmul.f32 %v433_v15, %v603_v1  ;;  %v553_v0 = vld [vmem:[%s1023_s0 + $0x40] sm:$0xff]  }
   0x6   :  { %v220_v20 = vadd.f32 %v617_v7, %v149_v12  ;;  %v221_v21 = vadd.f32 %v617_v7, %v150_v13  ;;  %v222_v24 = vadd.f32 %v617_v7, %v151_v16  ;;  %v223_v25 = vadd.f32 %v617_v7, %v152_v17  ;;  %v556_v13 = vld [vmem:[%s1023_s0 + $0x58] sm:$0xff]  }
   0x7   :  { %v224_v26 = vadd.f32 %v617_v7, %v153_v18  ;;  %v225_v27 = vadd.f32 %v617_v7, %v154_v19  ;;  %v226_v31 = vadd.f32 %v617_v7, %v155_v22  ;;  %v227_v32 = vadd.f32 %v617_v7, %v156_v23 }
   0x8   :  { %v284_v29 = vmax.f32 %v220_v20, 0.0  ;;  %v285_v30 = vmax.f32 %v221_v21, 0.0  ;;  %v286_v35 = vmax.f32 %v222_v24, 0.0  ;;  %v287_v36 = vmax.f32 %v223_v25, 0.0 }
   0x9   :  { %v288_v37 = vmax.f32 %v224_v26, 0.0  ;;  %v289_v38 = vmax.f32 %v225_v27, 0.0  ;;  %v290_v40 = vmax.f32 %v226_v31, 0.0  ;;  %v291_v41 = vmax.f32 %v227_v32, 0.0 }
   0xa   :  { %348 = vst [vmem:[%s1026_s3] sm:$0xff] %v284_v29  ;;  %349 = vst [vmem:[%s1026_s3 + $0x8] sm:$0xff] %v285_v30  ;;  %v436_v42 = vunpack.c.l.bf16 %v549_v28  ;;  %v437_v43 = vunpack.c.h.bf16 %v549_v28  ;;  %v440_v44 = vunpack.c.l.bf16 %v550_v33  ;;  %v441_v45 = vunpack.c.h.bf16 %v550_v33 }
   0xb   :  { %350 = vst [vmem:[%s1026_s3 + $0x10] sm:$0xff] %v286_v35  ;;  %351 = vst [vmem:[%s1026_s3 + $0x18] sm:$0xff] %v287_v36  ;;  %v444_v46 = vunpack.c.l.bf16 %v551_v34  ;;  %v445_v47 = vunpack.c.h.bf16 %v551_v34  ;;  %v448_v50 = vunpack.c.l.bf16 %v552_v39  ;;  %v449_v51 = vunpack.c.h.bf16 %v552_v39 }
   0xc   :  { %352 = vst [vmem:[%s1026_s3 + $0x20] sm:$0xff] %v288_v37  ;;  %353 = vst [vmem:[%s1026_s3 + $0x28] sm:$0xff] %v289_v38  ;;  %v157_v48 = vmul.f32 %v436_v42, %v603_v1  ;;  %v158_v49 = vmul.f32 %v437_v43, %v603_v1  ;;  %v159_v52 = vmul.f32 %v440_v44, %v603_v1  ;;  %v452_v16 = vunpack.c.l.bf16 %v553_v0  ;;  %v557_v38 = vld [vmem:[%s1023_s0 + $0x60] sm:$0xff]   ;;  %v558_v43 = vld [vmem:[%s1023_s0 + $0x68] sm:$0xff]  }
   0xd   :  { %354 = vst [vmem:[%s1026_s3 + $0x30] sm:$0xff] %v290_v40  ;;  %355 = vst [vmem:[%s1026_s3 + $0x38] sm:$0xff] %v291_v41  ;;  %v160_v53 = vmul.f32 %v441_v45, %v603_v1  ;;  %v161_v54 = vmul.f32 %v444_v46, %v603_v1  ;;  %v162_v55 = vmul.f32 %v445_v47, %v603_v1  ;;  %v453_v17 = vunpack.c.h.bf16 %v553_v0  ;;  %v559_v44 = vld [vmem:[%s1023_s0 + $0x70] sm:$0xff]  }
   0xe   :  { %v228_v56 = vadd.f32 %v617_v7, %v157_v48  ;;  %v229_v57 = vadd.f32 %v617_v7, %v158_v49  ;;  %v163_v58 = vmul.f32 %v448_v50, %v603_v1  ;;  %v164_v59 = vmul.f32 %v449_v51, %v603_v1  ;;  %v560_v49 = vld [vmem:[%s1023_s0 + $0x78] sm:$0xff]  }
   0xf   :  { %v230_v60 = vadd.f32 %v617_v7, %v159_v52  ;;  %v231_v61 = vadd.f32 %v617_v7, %v160_v53  ;;  %v232_v62 = vadd.f32 %v617_v7, %v161_v54  ;;  %v233_v63 = vadd.f32 %v617_v7, %v162_v55 }
  0x10   :  { %v292_v2 = vmax.f32 %v228_v56, 0.0  ;;  %v293_v3 = vmax.f32 %v229_v57, 0.0  ;;  %v234_v4 = vadd.f32 %v617_v7, %v163_v58  ;;  %v235_v5 = vadd.f32 %v617_v7, %v164_v59 }
  0x11   :  { %v294_v9 = vmax.f32 %v230_v60, 0.0  ;;  %v295_v10 = vmax.f32 %v231_v61, 0.0  ;;  %v296_v11 = vmax.f32 %v232_v62, 0.0  ;;  %v297_v12 = vmax.f32 %v233_v63, 0.0 }
  0x12   :  { %356 = vst [vmem:[%s1026_s3 + $0x40] sm:$0xff] %v292_v2  ;;  %357 = vst [vmem:[%s1026_s3 + $0x48] sm:$0xff] %v293_v3  ;;  %v298_v14 = vmax.f32 %v234_v4, 0.0  ;;  %v299_v15 = vmax.f32 %v235_v5, 0.0  ;;  %v456_v18 = vunpack.c.l.bf16 %v554_v6  ;;  %v457_v19 = vunpack.c.h.bf16 %v554_v6 }
  0x13   :  { %358 = vst [vmem:[%s1026_s3 + $0x50] sm:$0xff] %v294_v9  ;;  %359 = vst [vmem:[%s1026_s3 + $0x58] sm:$0xff] %v295_v10  ;;  %v460_v20 = vunpack.c.l.bf16 %v555_v8  ;;  %v461_v21 = vunpack.c.h.bf16 %v555_v8  ;;  %v165_v22 = vmul.f32 %v452_v16, %v603_v1  ;;  %v166_v23 = vmul.f32 %v453_v17, %v603_v1  ;;  %v562_v17 = vld [vmem:[%s1023_s0 + $0x88] sm:$0xff]  }
  0x14   :  { %360 = vst [vmem:[%s1026_s3 + $0x60] sm:$0xff] %v296_v11  ;;  %361 = vst [vmem:[%s1026_s3 + $0x68] sm:$0xff] %v297_v12  ;;  %v464_v24 = vunpack.c.l.bf16 %v556_v13  ;;  %v465_v25 = vunpack.c.h.bf16 %v556_v13  ;;  %v167_v26 = vmul.f32 %v456_v18, %v603_v1  ;;  %v168_v27 = vmul.f32 %v457_v19, %v603_v1  ;;  %v561_v12 = vld [vmem:[%s1023_s0 + $0x80] sm:$0xff]   ;;  %v563_v18 = vld [vmem:[%s1023_s0 + $0x90] sm:$0xff]  }
  0x15   :  { %362 = vst [vmem:[%s1026_s3 + $0x70] sm:$0xff] %v298_v14  ;;  %363 = vst [vmem:[%s1026_s3 + $0x78] sm:$0xff] %v299_v15  ;;  %v169_v28 = vmul.f32 %v460_v20, %v603_v1  ;;  %v170_v29 = vmul.f32 %v461_v21, %v603_v1  ;;  %v236_v30 = vadd.f32 %v617_v7, %v165_v22  ;;  %v468_v52 = vunpack.c.l.bf16 %v557_v38 }
  0x16   :  { %v237_v31 = vadd.f32 %v617_v7, %v166_v23  ;;  %v171_v32 = vmul.f32 %v464_v24, %v603_v1  ;;  %v172_v33 = vmul.f32 %v465_v25, %v603_v1  ;;  %v238_v34 = vadd.f32 %v617_v7, %v167_v26  ;;  %v564_v23 = vld [vmem:[%s1023_s0 + $0x98] sm:$0xff]  }
  0x17   :  { %v239_v35 = vadd.f32 %v617_v7, %v168_v27  ;;  %v240_v36 = vadd.f32 %v617_v7, %v169_v28  ;;  %v241_v37 = vadd.f32 %v617_v7, %v170_v29  ;;  %v300_v39 = vmax.f32 %v236_v30, 0.0 }
  0x18   :  { %v301_v40 = vmax.f32 %v237_v31, 0.0  ;;  %v242_v41 = vadd.f32 %v617_v7, %v171_v32  ;;  %v243_v42 = vadd.f32 %v617_v7, %v172_v33  ;;  %v302_v45 = vmax.f32 %v238_v34, 0.0 }
  0x19   :  { %v303_v46 = vmax.f32 %v239_v35, 0.0  ;;  %v304_v47 = vmax.f32 %v240_v36, 0.0  ;;  %v305_v48 = vmax.f32 %v241_v37, 0.0  ;;  %364 = vst [vmem:[%s1026_s3 + $0x80] sm:$0xff] %v300_v39  ;;  %v469_v53 = vunpack.c.h.bf16 %v557_v38 }
  0x1a   :  { %365 = vst [vmem:[%s1026_s3 + $0x88] sm:$0xff] %v301_v40  ;;  %v306_v50 = vmax.f32 %v242_v41, 0.0  ;;  %v307_v51 = vmax.f32 %v243_v42, 0.0  ;;  %366 = vst [vmem:[%s1026_s3 + $0x90] sm:$0xff] %v302_v45  ;;  %v472_v54 = vunpack.c.l.bf16 %v558_v43  ;;  %v473_v55 = vunpack.c.h.bf16 %v558_v43 }
  0x1b   :  { %367 = vst [vmem:[%s1026_s3 + $0x98] sm:$0xff] %v303_v46  ;;  %368 = vst [vmem:[%s1026_s3 + $0xa0] sm:$0xff] %v304_v47  ;;  %v476_v56 = vunpack.c.l.bf16 %v559_v44  ;;  %v477_v57 = vunpack.c.h.bf16 %v559_v44  ;;  %v173_v58 = vmul.f32 %v468_v52, %v603_v1  ;;  %v174_v59 = vmul.f32 %v469_v53, %v603_v1  ;;  %v566_v53 = vld [vmem:[%s1023_s0 + $0xa8] sm:$0xff]  }
  0x1c   :  { %369 = vst [vmem:[%s1026_s3 + $0xa8] sm:$0xff] %v305_v48  ;;  %370 = vst [vmem:[%s1026_s3 + $0xb0] sm:$0xff] %v306_v50  ;;  %v480_v60 = vunpack.c.l.bf16 %v560_v49  ;;  %v481_v61 = vunpack.c.h.bf16 %v560_v49  ;;  %v175_v62 = vmul.f32 %v472_v54, %v603_v1  ;;  %v176_v63 = vmul.f32 %v473_v55, %v603_v1  ;;  %v565_v48 = vld [vmem:[%s1023_s0 + $0xa0] sm:$0xff]   ;;  %v567_v54 = vld [vmem:[%s1023_s0 + $0xb0] sm:$0xff]  }
  0x1d   :  { %371 = vst [vmem:[%s1026_s3 + $0xb8] sm:$0xff] %v307_v51  ;;  %v177_v0 = vmul.f32 %v476_v56, %v603_v1  ;;  %v178_v2 = vmul.f32 %v477_v57, %v603_v1  ;;  %v244_v3 = vadd.f32 %v617_v7, %v173_v58  ;;  %v245_v4 = vadd.f32 %v617_v7, %v174_v59  ;;  %v568_v59 = vld [vmem:[%s1023_s0 + $0xb8] sm:$0xff]  }
  0x1e   :  { %v179_v5 = vmul.f32 %v480_v60, %v603_v1  ;;  %v180_v6 = vmul.f32 %v481_v61, %v603_v1  ;;  %v246_v8 = vadd.f32 %v617_v7, %v175_v62  ;;  %v247_v9 = vadd.f32 %v617_v7, %v176_v63 }
  0x1f   :  { %v248_v10 = vadd.f32 %v617_v7, %v177_v0  ;;  %v249_v11 = vadd.f32 %v617_v7, %v178_v2  ;;  %v308_v13 = vmax.f32 %v244_v3, 0.0  ;;  %v309_v14 = vmax.f32 %v245_v4, 0.0 }
  0x20   :  { %v250_v15 = vadd.f32 %v617_v7, %v179_v5  ;;  %v251_v16 = vadd.f32 %v617_v7, %v180_v6  ;;  %v310_v19 = vmax.f32 %v246_v8, 0.0  ;;  %v311_v20 = vmax.f32 %v247_v9, 0.0 }
  0x21   :  { %v312_v21 = vmax.f32 %v248_v10, 0.0  ;;  %v313_v22 = vmax.f32 %v249_v11, 0.0  ;;  %372 = vst [vmem:[%s1026_s3 + $0xc0] sm:$0xff] %v308_v13  ;;  %373 = vst [vmem:[%s1026_s3 + $0xc8] sm:$0xff] %v309_v14  ;;  %v484_v26 = vunpack.c.l.bf16 %v561_v12  ;;  %v485_v27 = vunpack.c.h.bf16 %v561_v12 }
  0x22   :  { %v314_v24 = vmax.f32 %v250_v15, 0.0  ;;  %v315_v25 = vmax.f32 %v251_v16, 0.0  ;;  %374 = vst [vmem:[%s1026_s3 + $0xd0] sm:$0xff] %v310_v19  ;;  %375 = vst [vmem:[%s1026_s3 + $0xd8] sm:$0xff] %v311_v20  ;;  %v488_v28 = vunpack.c.l.bf16 %v562_v17  ;;  %v489_v29 = vunpack.c.h.bf16 %v562_v17 }
  0x23   :  { %376 = vst [vmem:[%s1026_s3 + $0xe0] sm:$0xff] %v312_v21  ;;  %377 = vst [vmem:[%s1026_s3 + $0xe8] sm:$0xff] %v313_v22  ;;  %v492_v30 = vunpack.c.l.bf16 %v563_v18  ;;  %v493_v31 = vunpack.c.h.bf16 %v563_v18  ;;  %v181_v32 = vmul.f32 %v484_v26, %v603_v1  ;;  %v182_v33 = vmul.f32 %v485_v27, %v603_v1  ;;  %v569_v22 = vld [vmem:[%s1023_s0 + $0xc0] sm:$0xff]   ;;  %v570_v27 = vld [vmem:[%s1023_s0 + $0xc8] sm:$0xff]  }
  0x24   :  { %378 = vst [vmem:[%s1026_s3 + $0xf0] sm:$0xff] %v314_v24  ;;  %379 = vst [vmem:[%s1026_s3 + $0xf8] sm:$0xff] %v315_v25  ;;  %v496_v34 = vunpack.c.l.bf16 %v564_v23  ;;  %v497_v35 = vunpack.c.h.bf16 %v564_v23  ;;  %v183_v36 = vmul.f32 %v488_v28, %v603_v1  ;;  %v184_v37 = vmul.f32 %v489_v29, %v603_v1  ;;  %v571_v28 = vld [vmem:[%s1023_s0 + $0xd0] sm:$0xff]  }
  0x25   :  { %v185_v38 = vmul.f32 %v492_v30, %v603_v1  ;;  %v186_v39 = vmul.f32 %v493_v31, %v603_v1  ;;  %v252_v40 = vadd.f32 %v617_v7, %v181_v32  ;;  %v253_v41 = vadd.f32 %v617_v7, %v182_v33  ;;  %v572_v33 = vld [vmem:[%s1023_s0 + $0xd8] sm:$0xff]  }
  0x26   :  { %v187_v42 = vmul.f32 %v496_v34, %v603_v1  ;;  %v188_v43 = vmul.f32 %v497_v35, %v603_v1  ;;  %v254_v44 = vadd.f32 %v617_v7, %v183_v36  ;;  %v255_v45 = vadd.f32 %v617_v7, %v184_v37 }
  0x27   :  { %v256_v46 = vadd.f32 %v617_v7, %v185_v38  ;;  %v257_v47 = vadd.f32 %v617_v7, %v186_v39  ;;  %v316_v49 = vmax.f32 %v252_v40, 0.0  ;;  %v317_v50 = vmax.f32 %v253_v41, 0.0 }
  0x28   :  { %v258_v51 = vadd.f32 %v617_v7, %v187_v42  ;;  %v259_v52 = vadd.f32 %v617_v7, %v188_v43  ;;  %v318_v55 = vmax.f32 %v254_v44, 0.0  ;;  %v319_v56 = vmax.f32 %v255_v45, 0.0 }
  0x29   :  { %v320_v57 = vmax.f32 %v256_v46, 0.0  ;;  %v321_v58 = vmax.f32 %v257_v47, 0.0  ;;  %380 = vst [vmem:[%s1026_s3 + $0x100] sm:$0xff] %v316_v49  ;;  %381 = vst [vmem:[%s1026_s3 + $0x108] sm:$0xff] %v317_v50  ;;  %v500_v62 = vunpack.c.l.bf16 %v565_v48  ;;  %v501_v63 = vunpack.c.h.bf16 %v565_v48 }
  0x2a   :  { %v322_v60 = vmax.f32 %v258_v51, 0.0  ;;  %v323_v61 = vmax.f32 %v259_v52, 0.0  ;;  %382 = vst [vmem:[%s1026_s3 + $0x110] sm:$0xff] %v318_v55  ;;  %383 = vst [vmem:[%s1026_s3 + $0x118] sm:$0xff] %v319_v56  ;;  %v504_v0 = vunpack.c.l.bf16 %v566_v53  ;;  %v505_v2 = vunpack.c.h.bf16 %v566_v53 }
  0x2b   :  { %384 = vst [vmem:[%s1026_s3 + $0x120] sm:$0xff] %v320_v57  ;;  %385 = vst [vmem:[%s1026_s3 + $0x128] sm:$0xff] %v321_v58  ;;  %v508_v3 = vunpack.c.l.bf16 %v567_v54  ;;  %v509_v4 = vunpack.c.h.bf16 %v567_v54  ;;  %v189_v5 = vmul.f32 %v500_v62, %v603_v1  ;;  %v190_v6 = vmul.f32 %v501_v63, %v603_v1  ;;  %v573_v58 = vld [vmem:[%s1023_s0 + $0xe0] sm:$0xff]   ;;  %v574_v63 = vld [vmem:[%s1023_s0 + $0xe8] sm:$0xff]  }
  0x2c   :  { %386 = vst [vmem:[%s1026_s3 + $0x130] sm:$0xff] %v322_v60  ;;  %387 = vst [vmem:[%s1026_s3 + $0x138] sm:$0xff] %v323_v61  ;;  %v512_v8 = vunpack.c.l.bf16 %v568_v59  ;;  %v513_v9 = vunpack.c.h.bf16 %v568_v59  ;;  %v191_v10 = vmul.f32 %v504_v0, %v603_v1  ;;  %v192_v11 = vmul.f32 %v505_v2, %v603_v1  ;;  %v575_v0 = vld [vmem:[%s1023_s0 + $0xf0] sm:$0xff]  }
  0x2d   :  { %v193_v12 = vmul.f32 %v508_v3, %v603_v1  ;;  %v194_v13 = vmul.f32 %v509_v4, %v603_v1  ;;  %v260_v14 = vadd.f32 %v617_v7, %v189_v5  ;;  %v261_v15 = vadd.f32 %v617_v7, %v190_v6  ;;  %v576_v6 = vld [vmem:[%s1023_s0 + $0xf8] sm:$0xff]  }
  0x2e   :  { %v195_v16 = vmul.f32 %v512_v8, %v603_v1  ;;  %v196_v17 = vmul.f32 %v513_v9, %v603_v1  ;;  %v262_v18 = vadd.f32 %v617_v7, %v191_v10  ;;  %v263_v19 = vadd.f32 %v617_v7, %v192_v11 }
  0x2f   :  { %v264_v20 = vadd.f32 %v617_v7, %v193_v12  ;;  %v265_v21 = vadd.f32 %v617_v7, %v194_v13  ;;  %v324_v23 = vmax.f32 %v260_v14, 0.0  ;;  %v325_v24 = vmax.f32 %v261_v15, 0.0 }
  0x30   :  { %v266_v25 = vadd.f32 %v617_v7, %v195_v16  ;;  %v267_v26 = vadd.f32 %v617_v7, %v196_v17  ;;  %v326_v29 = vmax.f32 %v262_v18, 0.0  ;;  %v327_v30 = vmax.f32 %v263_v19, 0.0 }
  0x31   :  { %v328_v31 = vmax.f32 %v264_v20, 0.0  ;;  %v329_v32 = vmax.f32 %v265_v21, 0.0  ;;  %388 = vst [vmem:[%s1026_s3 + $0x140] sm:$0xff] %v324_v23  ;;  %389 = vst [vmem:[%s1026_s3 + $0x148] sm:$0xff] %v325_v24  ;;  %v516_v36 = vunpack.c.l.bf16 %v569_v22  ;;  %v517_v37 = vunpack.c.h.bf16 %v569_v22 }
  0x32   :  { %v330_v34 = vmax.f32 %v266_v25, 0.0  ;;  %v331_v35 = vmax.f32 %v267_v26, 0.0  ;;  %390 = vst [vmem:[%s1026_s3 + $0x150] sm:$0xff] %v326_v29  ;;  %391 = vst [vmem:[%s1026_s3 + $0x158] sm:$0xff] %v327_v30  ;;  %v520_v38 = vunpack.c.l.bf16 %v570_v27  ;;  %v521_v39 = vunpack.c.h.bf16 %v570_v27 }
  0x33   :  { %392 = vst [vmem:[%s1026_s3 + $0x160] sm:$0xff] %v328_v31  ;;  %393 = vst [vmem:[%s1026_s3 + $0x168] sm:$0xff] %v329_v32  ;;  %v524_v40 = vunpack.c.l.bf16 %v571_v28  ;;  %v525_v41 = vunpack.c.h.bf16 %v571_v28  ;;  %v197_v42 = vmul.f32 %v516_v36, %v603_v1  ;;  %v198_v43 = vmul.f32 %v517_v37, %v603_v1 }
  0x34   :  { %394 = vst [vmem:[%s1026_s3 + $0x170] sm:$0xff] %v330_v34  ;;  %395 = vst [vmem:[%s1026_s3 + $0x178] sm:$0xff] %v331_v35  ;;  %v528_v44 = vunpack.c.l.bf16 %v572_v33  ;;  %v529_v45 = vunpack.c.h.bf16 %v572_v33  ;;  %v199_v46 = vmul.f32 %v520_v38, %v603_v1  ;;  %v200_v47 = vmul.f32 %v521_v39, %v603_v1 }
  0x35   :  { %v201_v48 = vmul.f32 %v524_v40, %v603_v1  ;;  %v202_v49 = vmul.f32 %v525_v41, %v603_v1  ;;  %v268_v50 = vadd.f32 %v617_v7, %v197_v42  ;;  %v269_v51 = vadd.f32 %v617_v7, %v198_v43 }
  0x36   :  { %v203_v52 = vmul.f32 %v528_v44, %v603_v1  ;;  %v204_v53 = vmul.f32 %v529_v45, %v603_v1  ;;  %v270_v54 = vadd.f32 %v617_v7, %v199_v46  ;;  %v271_v55 = vadd.f32 %v617_v7, %v200_v47 }
  0x37   :  { %v272_v56 = vadd.f32 %v617_v7, %v201_v48  ;;  %v273_v57 = vadd.f32 %v617_v7, %v202_v49  ;;  %v332_v59 = vmax.f32 %v268_v50, 0.0  ;;  %v333_v60 = vmax.f32 %v269_v51, 0.0 }
  0x38   :  { %v274_v61 = vadd.f32 %v617_v7, %v203_v52  ;;  %v275_v62 = vadd.f32 %v617_v7, %v204_v53  ;;  %v334_v2 = vmax.f32 %v270_v54, 0.0  ;;  %v335_v3 = vmax.f32 %v271_v55, 0.0 }
  0x39   :  { %v336_v4 = vmax.f32 %v272_v56, 0.0  ;;  %v337_v5 = vmax.f32 %v273_v57, 0.0  ;;  %396 = vst [vmem:[%s1026_s3 + $0x180] sm:$0xff] %v332_v59  ;;  %397 = vst [vmem:[%s1026_s3 + $0x188] sm:$0xff] %v333_v60  ;;  %v532_v10 = vunpack.c.l.bf16 %v573_v58  ;;  %v533_v11 = vunpack.c.h.bf16 %v573_v58 }
  0x3a   :  { %v338_v8 = vmax.f32 %v274_v61, 0.0  ;;  %v339_v9 = vmax.f32 %v275_v62, 0.0  ;;  %398 = vst [vmem:[%s1026_s3 + $0x190] sm:$0xff] %v334_v2  ;;  %399 = vst [vmem:[%s1026_s3 + $0x198] sm:$0xff] %v335_v3  ;;  %v536_v12 = vunpack.c.l.bf16 %v574_v63  ;;  %v537_v13 = vunpack.c.h.bf16 %v574_v63 }
  0x3b   :  { %400 = vst [vmem:[%s1026_s3 + $0x1a0] sm:$0xff] %v336_v4  ;;  %401 = vst [vmem:[%s1026_s3 + $0x1a8] sm:$0xff] %v337_v5  ;;  %v540_v14 = vunpack.c.l.bf16 %v575_v0  ;;  %v541_v15 = vunpack.c.h.bf16 %v575_v0  ;;  %v205_v16 = vmul.f32 %v532_v10, %v603_v1  ;;  %v206_v17 = vmul.f32 %v533_v11, %v603_v1 }
  0x3c   :  { %402 = vst [vmem:[%s1026_s3 + $0x1b0] sm:$0xff] %v338_v8  ;;  %403 = vst [vmem:[%s1026_s3 + $0x1b8] sm:$0xff] %v339_v9  ;;  %v544_v18 = vunpack.c.l.bf16 %v576_v6  ;;  %v545_v19 = vunpack.c.h.bf16 %v576_v6  ;;  %v207_v20 = vmul.f32 %v536_v12, %v603_v1  ;;  %v208_v21 = vmul.f32 %v537_v13, %v603_v1 }
  0x3d   :  { %v209_v22 = vmul.f32 %v540_v14, %v603_v1  ;;  %v210_v23 = vmul.f32 %v541_v15, %v603_v1  ;;  %v276_v24 = vadd.f32 %v617_v7, %v205_v16  ;;  %v277_v25 = vadd.f32 %v617_v7, %v206_v17 }
  0x3e   :  { %v211_v26 = vmul.f32 %v544_v18, %v603_v1  ;;  %v212_v27 = vmul.f32 %v545_v19, %v603_v1  ;;  %v278_v28 = vadd.f32 %v617_v7, %v207_v20  ;;  %v279_v29 = vadd.f32 %v617_v7, %v208_v21 }
  0x3f   :  { %v280_v30 = vadd.f32 %v617_v7, %v209_v22  ;;  %v281_v31 = vadd.f32 %v617_v7, %v210_v23  ;;  %v340_v32 = vmax.f32 %v276_v24, 0.0  ;;  %v341_v33 = vmax.f32 %v277_v25, 0.0 }
  0x40   :  { %v282_v34 = vadd.f32 %v617_v7, %v211_v26  ;;  %v283_v35 = vadd.f32 %v617_v7, %v212_v27  ;;  %v342_v36 = vmax.f32 %v278_v28, 0.0  ;;  %v343_v37 = vmax.f32 %v279_v29, 0.0 }
  0x41   :  { %v344_v38 = vmax.f32 %v280_v30, 0.0  ;;  %v345_v39 = vmax.f32 %v281_v31, 0.0  ;;  %404 = vst [vmem:[%s1026_s3 + $0x1c0] sm:$0xff] %v340_v32  ;;  %405 = vst [vmem:[%s1026_s3 + $0x1c8] sm:$0xff] %v341_v33 }
  0x42   :  { %v346_v1 = vmax.f32 %v282_v34, 0.0  ;;  %v347_v40 = vmax.f32 %v283_v35, 0.0  ;;  %406 = vst [vmem:[%s1026_s3 + $0x1d0] sm:$0xff] %v342_v36  ;;  %407 = vst [vmem:[%s1026_s3 + $0x1d8] sm:$0xff] %v343_v37 }
  0x43   :  { %408 = vst [vmem:[%s1026_s3 + $0x1e0] sm:$0xff] %v344_v38  ;;  %409 = vst [vmem:[%s1026_s3 + $0x1e8] sm:$0xff] %v345_v39 }
  0x44   :  { %410 = vst [vmem:[%s1026_s3 + $0x1f0] sm:$0xff] %v346_v1  ;;  %411 = vst [vmem:[%s1026_s3 + $0x1f8] sm:$0xff] %v347_v40 }

// kernel: double_conv.6
= control target key start
LH: loop header
LB: loop body
LE: loop exit
PB: predicated region body
PF: predicated region fallthrough
CT: control target
= control target key end

     0   :  { %vm274_vm0 = vcmask 588800   ;;  %vm371_vm1 = vcmask 1043456   ;;  %vm1186_vm2 = vcmask 1040384   ;;  %vm1188_vm3 = vcmask 1041408   ;;  %s2201_s1 = inlined_call_operand.vmem [shape: bf16[72,128], index: 1, kind: input, shape index: {}]   ;;  %s2202_s0 = inlined_call_operand.vmem [shape: bf16[512,72], index: 0, kind: input, shape index: {}]   ;;  %s2203_s2 = inlined_call_operand.vmem [shape: bf16[512,128], index: 2, kind: output, shape index: {0}]   ;;  %s2204_s3 = inlined_call_operand.vmem [shape: f32[8,128], index: 3, kind: output, shape index: {1}]  }
   0x1   :  { %v1710_v0 = vld [vmem:[%s2201_s1] sm:$0xff]   ;;  %v1711_v1 = vld [vmem:[%s2201_s1 + $0x8] sm:$0xff]   ;;  %v1712_v2 = vld [vmem:[%s2201_s1 + $0x10] sm:$0xff]  }
   0x2   :  { %1624 = vmatprep.subr.bf16.mxu0 %v1710_v0  ;;  %1698 = vmatprep.subr.bf16.mxu1 %v1710_v0  ;;  %v1715_v3 = vld [vmem:[%s2202_s0] sm:$0xff]   ;;  %v1713_v4 = vld [vmem:[%s2201_s1 + $0x18] sm:$0xff]   ;;  %v1716_v7 = vld [vmem:[%s2202_s0 + $0x8] sm:$0xff]  }
   0x3   :  { %1625 = vmatpush3.bf16.msra.mxu0 %v1710_v0  ;;  %1703 = vmatpush3.bf16.msra.mxu1 %v1710_v0  ;;  %v1714_v5 = vld [vmem:[%s2201_s1 + $0x20] ss:$0 sps:$4 sm:$0xff]   ;;  %v1717_v8 = vld [vmem:[%s2202_s0 + $0x10] sm:$0xff]   ;;  %v1732_v10 = vld [vmem:[%s2202_s0 + $0x88] sm:$0xff]  }
   0x4   :  { %1626 = vmatprep.subr.bf16.mxu0 %v1711_v1  ;;  %1699 = vmatprep.subr.bf16.mxu1 %v1711_v1  ;;  %v373_v6 = vsel %vm371_vm1, %v1714_v5, 0  ;;  %v1731_v9 = vld [vmem:[%s2202_s0 + $0x80] sm:$0xff]   ;;  %v1733_v11 = vld [vmem:[%s2202_s0 + $0x90] sm:$0xff]   ;;  %v1718_v12 = vld [vmem:[%s2202_s0 + $0x18] sm:$0xff]  }
   0x5   :  { %1634 = vmatprep.mubr.msk.bf16.mxu0 %vm274_vm0, %v1715_v3  ;;  %1666 = vmatprep.mubr.msk.bf16.mxu1 %vm274_vm0, %v1731_v9  ;;  %v1719_v13 = vld [vmem:[%s2202_s0 + $0x20] sm:$0xff]   ;;  %v1734_v14 = vld [vmem:[%s2202_s0 + $0x98] sm:$0xff]   ;;  %v1720_v16 = vld [vmem:[%s2202_s0 + $0x28] sm:$0xff]  }
   0x6   :  { %v1735_v15 = vld [vmem:[%s2202_s0 + $0xa0] sm:$0xff]   ;;  %v1721_v17 = vld [vmem:[%s2202_s0 + $0x30] sm:$0xff]   ;;  %v1736_v18 = vld [vmem:[%s2202_s0 + $0xa8] sm:$0xff]  }
   0x7   :  { %1627 = vmatpush3.bf16.msra.mxu0 %v1711_v1  ;;  %1704 = vmatpush3.bf16.msra.mxu1 %v1711_v1  ;;  %v1737_v19 = vld [vmem:[%s2202_s0 + $0xb0] sm:$0xff]   ;;  %v1722_v20 = vld [vmem:[%s2202_s0 + $0x38] sm:$0xff]   ;;  %v1723_v21 = vld [vmem:[%s2202_s0 + $0x40] sm:$0xff]  }
   0x8   :  { %1628 = vmatprep.subr.bf16.mxu0 %v1712_v2  ;;  %1700 = vmatprep.subr.bf16.mxu1 %v1712_v2  ;;  %v1738_v22 = vld [vmem:[%s2202_s0 + $0xb8] sm:$0xff]   ;;  %v1739_v23 = vld [vmem:[%s2202_s0 + $0xc0] sm:$0xff]   ;;  %v1724_v24 = vld [vmem:[%s2202_s0 + $0x48] sm:$0xff]  }
   0x9   :  { %v1725_v25 = vld [vmem:[%s2202_s0 + $0x50] sm:$0xff]   ;;  %v1740_v26 = vld [vmem:[%s2202_s0 + $0xc8] sm:$0xff]   ;;  %v1726_v28 = vld [vmem:[%s2202_s0 + $0x58] sm:$0xff]  }
   0xa   :  { %v1741_v27 = vld [vmem:[%s2202_s0 + $0xd0] sm:$0xff]   ;;  %v1727_v29 = vld [vmem:[%s2202_s0 + $0x60] sm:$0xff]   ;;  %v1742_v30 = vld [vmem:[%s2202_s0 + $0xd8] sm:$0xff]  }
   0xb   :  { %1629 = vmatpush3.bf16.msra.mxu0 %v1712_v2  ;;  %1705 = vmatpush3.bf16.msra.mxu1 %v1712_v2  ;;  %v1743_v31 = vld [vmem:[%s2202_s0 + $0xe0] sm:$0xff]   ;;  %v1728_v32 = vld [vmem:[%s2202_s0 + $0x68] sm:$0xff]   ;;  %v1729_v33 = vld [vmem:[%s2202_s0 + $0x70] sm:$0xff]  }
   0xc   :  { %1630 = vmatprep.subr.bf16.mxu0 %v1713_v4  ;;  %1701 = vmatprep.subr.bf16.mxu1 %v1713_v4  ;;  %v1744_v34 = vld [vmem:[%s2202_s0 + $0xe8] sm:$0xff]   ;;  %v1745_v35 = vld [vmem:[%s2202_s0 + $0xf0] sm:$0xff]   ;;  %v1730_v36 = vld [vmem:[%s2202_s0 + $0x78] sm:$0xff]  }
   0xd   :  { %v1746_v37 = vld [vmem:[%s2202_s0 + $0xf8] sm:$0xff]  }
   0xf   :  { %1631 = vmatpush3.bf16.msra.mxu0 %v1713_v4  ;;  %1706 = vmatpush3.bf16.msra.mxu1 %v1713_v4 }
  0x10   :  { %1708 = vmatprep.subr.msk.bf16.mxu0 %vm371_vm1, %v1714_v5  ;;  %1709 = vmatprep.subr.msk.bf16.mxu1 %vm371_vm1, %v1714_v5 }
  0x13   :  { %1633 = vmatpush3.bf16.msra.mxu0 %v373_v6  ;;  %1707 = vmatpush3.bf16.msra.mxu1 %v373_v6 }
  0x16   :  { %1635 = vmatmul.mubr.msk.bf16.vlgmr.msra.gmra.mrb[0].mxu0 %vm274_vm0, %v1716_v7  ;;  %1667 = vmatmul.mubr.msk.bf16.vlgmr.msra.gmra.mrb[0].mxu1 %vm274_vm0, %v1732_v10 }
  0x17   :  { %1638 = vmatprep.mubr.msk.bf16.mxu0 %vm274_vm0, %v1717_v8  ;;  %1670 = vmatprep.mubr.msk.bf16.mxu1 %vm274_vm0, %v1733_v11 }
  0x1e   :  { %1639 = vmatmul.mubr.msk.bf16.gmra.mrb[4].mxu0 %vm274_vm0, %v1718_v12  ;;  %1671 = vmatmul.mubr.msk.bf16.gmra.mrb[4].mxu1 %vm274_vm0, %v1734_v14 }
  0x1f   :  { %1642 = vmatprep.mubr.msk.bf16.mxu0 %vm274_vm0, %v1719_v13  ;;  %1674 = vmatprep.mubr.msk.bf16.mxu1 %vm274_vm0, %v1735_v15 }
  0x26   :  { %1643 = vmatmul.mubr.msk.bf16.gmra.mrb[8].mxu0 %vm274_vm0, %v1720_v16  ;;  %1675 = vmatmul.mubr.msk.bf16.gmra.mrb[8].mxu1 %vm274_vm0, %v1736_v18 }
  0x27   :  { %1646 = vmatprep.mubr.msk.bf16.mxu0 %vm274_vm0, %v1721_v17  ;;  %1678 = vmatprep.mubr.msk.bf16.mxu1 %vm274_vm0, %v1737_v19 }
  0x2e   :  { %1647 = vmatmul.mubr.msk.bf16.gmra.mrb[12].mxu0 %vm274_vm0, %v1722_v20  ;;  %1679 = vmatmul.mubr.msk.bf16.gmra.mrb[12].mxu1 %vm274_vm0, %v1738_v22 }
  0x2f   :  { %1650 = vmatprep.mubr.msk.bf16.mxu0 %vm274_vm0, %v1723_v21  ;;  %1682 = vmatprep.mubr.msk.bf16.mxu1 %vm274_vm0, %v1739_v23 }
  0x36   :  { %1651 = vmatmul.mubr.msk.bf16.gmra.mrb[16].mxu0 %vm274_vm0, %v1724_v24  ;;  %1683 = vmatmul.mubr.msk.bf16.gmra.mrb[16].mxu1 %vm274_vm0, %v1740_v26 }
  0x37   :  { %1654 = vmatprep.mubr.msk.bf16.mxu0 %vm274_vm0, %v1725_v25  ;;  %1686 = vmatprep.mubr.msk.bf16.mxu1 %vm274_vm0, %v1741_v27 }
  0x3e   :  { %1655 = vmatmul.mubr.msk.bf16.gmra.mrb[20].mxu0 %vm274_vm0, %v1726_v28  ;;  %1687 = vmatmul.mubr.msk.bf16.gmra.mrb[20].mxu1 %vm274_vm0, %v1742_v30 }
  0x3f   :  { %1658 = vmatprep.mubr.msk.bf16.mxu0 %vm274_vm0, %v1727_v29  ;;  %1690 = vmatprep.mubr.msk.bf16.mxu1 %vm274_vm0, %v1743_v31 }
  0x46   :  { %1659 = vmatmul.mubr.msk.bf16.gmra.mrb[24].mxu0 %vm274_vm0, %v1728_v32  ;;  %1691 = vmatmul.mubr.msk.bf16.gmra.mrb[24].mxu1 %vm274_vm0, %v1744_v34 }
  0x47   :  { %1662 = vmatprep.mubr.msk.bf16.mxu0 %vm274_vm0, %v1729_v33  ;;  %1694 = vmatprep.mubr.msk.bf16.mxu1 %vm274_vm0, %v1745_v35 }
  0x4e   :  { %1663 = vmatmul.mubr.msk.bf16.gmra.mrb[28].mxu0 %vm274_vm0, %v1730_v36  ;;  %1695 = vmatmul.mubr.msk.bf16.gmra.mrb[28].mxu1 %vm274_vm0, %v1746_v37 }
  0xe9   :  { %v1636_v38 = vpop.f32.mrb[0].mxu0  ;;  %v1910_v41 = vpop.f32.mrb[0].mxu1 }
  0xea   :  { %v409_v39 = vpop.f32.mrb[1].mxu0  ;;  %v1912_v44 = vpop.f32.mrb[1].mxu1  ;;  %v1055_v52 = vmul.f32 %v1636_v38, %v1636_v38 }
  0xeb   :  { %v1637_v40 = vpop.f32.mrb[2].mxu0  ;;  %v1053_v45 = vmul.f32 %v409_v39, %v409_v39  ;;  %v1914_v49 = vpop.f32.mrb[2].mxu1 }
  0xec   :  { %v1404_v42 = vpack.c.bf16 %v1637_v40, %v1636_v38  ;;  %v412_v43 = vpop.f32.mrb[3].mxu0  ;;  %v1484_v50 = vpack.c.bf16 %v1914_v49, %v1910_v41  ;;  %v1921_v51 = vpop.f32.mrb[3].mxu1  ;;  %v1056_v56 = vmul.f32 %v1637_v40, %v1637_v40 }
  0xed   :  { %v1399_v46 = vpack.c.bf16 %v412_v43, %v409_v39  ;;  %v984_v47 = vadd.f32 %v412_v43, %v409_v39  ;;  %v1054_v48 = vmul.f32 %v412_v43, %v412_v43  ;;  %v1479_v55 = vpack.c.bf16 %v1921_v51, %v1912_v44 }
  0xee   :  { %1556 = vst [vmem:[%s2203_s2 + $0x8] sm:$0xff] %v1404_v42   ;;  %1572 = vst [vmem:[%s2203_s2 + $0x88] sm:$0xff] %v1484_v50  }
  0xef   :  { %1400 = vst [vmem:[%s2203_s2] sm:$0xff] %v1399_v46   ;;  %v985_v53 = vadd.f32 %v1636_v38, %v984_v47  ;;  %v1117_v54 = vadd.f32 %v1054_v48, %v1053_v45  ;;  %1571 = vst [vmem:[%s2203_s2 + $0x80] sm:$0xff] %v1479_v55  }
  0xf1   :  { %v1118_v57 = vadd.f32 %v1117_v54, %v1055_v52  ;;  %v1640_v58 = vpop.f32.mrb[4].mxu0  ;;  %v986_v59 = vadd.f32 %v1637_v40, %v985_v53  ;;  %v1934_v1 = vpop.f32.mrb[4].mxu1 }
  0xf2   :  { %v425_v60 = vpop.f32.mrb[5].mxu0  ;;  %v1936_v4 = vpop.f32.mrb[5].mxu1  ;;  %v1059_v12 = vmul.f32 %v1640_v58, %v1640_v58 }
  0xf3   :  { %v987_v61 = vadd.f32 %v986_v59, %v425_v60  ;;  %v1057_v62 = vmul.f32 %v425_v60, %v425_v60  ;;  %v1119_v63 = vadd.f32 %v1118_v57, %v1056_v56  ;;  %v1641_v0 = vpop.f32.mrb[6].mxu0  ;;  %v1938_v9 = vpop.f32.mrb[6].mxu1 }
  0xf4   :  { %v1414_v2 = vpack.c.bf16 %v1641_v0, %v1640_v58  ;;  %v428_v3 = vpop.f32.mrb[7].mxu0  ;;  %v1494_v10 = vpack.c.bf16 %v1938_v9, %v1934_v1  ;;  %v1945_v11 = vpop.f32.mrb[7].mxu1  ;;  %v1060_v16 = vmul.f32 %v1641_v0, %v1641_v0 }
  0xf5   :  { %v1120_v5 = vadd.f32 %v1119_v63, %v1057_v62  ;;  %v1409_v6 = vpack.c.bf16 %v428_v3, %v425_v60  ;;  %v988_v7 = vadd.f32 %v987_v61, %v428_v3  ;;  %v1058_v8 = vmul.f32 %v428_v3, %v428_v3 }
  0xf6   :  { %1558 = vst [vmem:[%s2203_s2 + $0x18] sm:$0xff] %v1414_v2   ;;  %v1489_v15 = vpack.c.bf16 %v1945_v11, %v1936_v4  ;;  %1574 = vst [vmem:[%s2203_s2 + $0x98] sm:$0xff] %v1494_v10  }
  0xf7   :  { %1557 = vst [vmem:[%s2203_s2 + $0x10] sm:$0xff] %v1409_v6   ;;  %v989_v13 = vadd.f32 %v1640_v58, %v988_v7  ;;  %v1121_v14 = vadd.f32 %v1120_v5, %v1058_v8 }
  0xf8   :  { %1573 = vst [vmem:[%s2203_s2 + $0x90] sm:$0xff] %v1489_v15  }
  0xf9   :  { %v1122_v17 = vadd.f32 %v1121_v14, %v1059_v12  ;;  %v1644_v18 = vpop.f32.mrb[8].mxu0  ;;  %v990_v19 = vadd.f32 %v1641_v0, %v989_v13  ;;  %v1958_v25 = vpop.f32.mrb[8].mxu1 }
  0xfa   :  { %v441_v20 = vpop.f32.mrb[9].mxu0  ;;  %v1960_v28 = vpop.f32.mrb[9].mxu1  ;;  %v1063_v36 = vmul.f32 %v1644_v18, %v1644_v18 }
  0xfb   :  { %v991_v21 = vadd.f32 %v990_v19, %v441_v20  ;;  %v1061_v22 = vmul.f32 %v441_v20, %v441_v20  ;;  %v1123_v23 = vadd.f32 %v1122_v17, %v1060_v16  ;;  %v1645_v24 = vpop.f32.mrb[10].mxu0  ;;  %v1962_v33 = vpop.f32.mrb[10].mxu1 }
  0xfc   :  { %v1424_v26 = vpack.c.bf16 %v1645_v24, %v1644_v18  ;;  %v444_v27 = vpop.f32.mrb[11].mxu0  ;;  %v1504_v34 = vpack.c.bf16 %v1962_v33, %v1958_v25  ;;  %v1969_v35 = vpop.f32.mrb[11].mxu1  ;;  %v1064_v40 = vmul.f32 %v1645_v24, %v1645_v24 }
  0xfd   :  { %v1124_v29 = vadd.f32 %v1123_v23, %v1061_v22  ;;  %v1419_v30 = vpack.c.bf16 %v444_v27, %v441_v20  ;;  %v992_v31 = vadd.f32 %v991_v21, %v444_v27  ;;  %v1062_v32 = vmul.f32 %v444_v27, %v444_v27 }
  0xfe   :  { %1560 = vst [vmem:[%s2203_s2 + $0x28] sm:$0xff] %v1424_v26   ;;  %v1499_v39 = vpack.c.bf16 %v1969_v35, %v1960_v28  ;;  %1576 = vst [vmem:[%s2203_s2 + $0xa8] sm:$0xff] %v1504_v34  }
  0xff   :  { %1559 = vst [vmem:[%s2203_s2 + $0x20] sm:$0xff] %v1419_v30   ;;  %v993_v37 = vadd.f32 %v1644_v18, %v992_v31  ;;  %v1125_v38 = vadd.f32 %v1124_v29, %v1062_v32 }
 0x100   :  { %1575 = vst [vmem:[%s2203_s2 + $0xa0] sm:$0xff] %v1499_v39  }
 0x101   :  { %v1126_v42 = vadd.f32 %v1125_v38, %v1063_v36  ;;  %v1648_v43 = vpop.f32.mrb[12].mxu0  ;;  %v994_v45 = vadd.f32 %v1645_v24, %v993_v37  ;;  %v1982_v53 = vpop.f32.mrb[12].mxu1 }
 0x102   :  { %v457_v46 = vpop.f32.mrb[13].mxu0  ;;  %v1984_v56 = vpop.f32.mrb[13].mxu1  ;;  %v1067_v0 = vmul.f32 %v1648_v43, %v1648_v43 }
 0x103   :  { %v995_v47 = vadd.f32 %v994_v45, %v457_v46  ;;  %v1065_v48 = vmul.f32 %v457_v46, %v457_v46  ;;  %v1127_v50 = vadd.f32 %v1126_v42, %v1064_v40  ;;  %v1649_v52 = vpop.f32.mrb[14].mxu0  ;;  %v1986_v61 = vpop.f32.mrb[14].mxu1 }
 0x104   :  { %v1434_v54 = vpack.c.bf16 %v1649_v52, %v1648_v43  ;;  %v460_v55 = vpop.f32.mrb[15].mxu0  ;;  %v1514_v62 = vpack.c.bf16 %v1986_v61, %v1982_v53  ;;  %v1993_v63 = vpop.f32.mrb[15].mxu1  ;;  %v1068_v6 = vmul.f32 %v1649_v52, %v1649_v52 }
 0x105   :  { %v1128_v57 = vadd.f32 %v1127_v50, %v1065_v48  ;;  %v1429_v58 = vpack.c.bf16 %v460_v55, %v457_v46  ;;  %v996_v59 = vadd.f32 %v995_v47, %v460_v55  ;;  %v1066_v60 = vmul.f32 %v460_v55, %v460_v55 }
 0x106   :  { %1562 = vst [vmem:[%s2203_s2 + $0x38] sm:$0xff] %v1434_v54   ;;  %v1509_v5 = vpack.c.bf16 %v1993_v63, %v1984_v56  ;;  %1578 = vst [vmem:[%s2203_s2 + $0xb8] sm:$0xff] %v1514_v62  }
 0x107   :  { %1561 = vst [vmem:[%s2203_s2 + $0x30] sm:$0xff] %v1429_v58   ;;  %v997_v2 = vadd.f32 %v1648_v43, %v996_v59  ;;  %v1129_v3 = vadd.f32 %v1128_v57, %v1066_v60 }
 0x108   :  { %1577 = vst [vmem:[%s2203_s2 + $0xb0] sm:$0xff] %v1509_v5  }
 0x109   :  { %v1130_v7 = vadd.f32 %v1129_v3, %v1067_v0  ;;  %v1652_v8 = vpop.f32.mrb[16].mxu0  ;;  %v998_v10 = vadd.f32 %v1649_v52, %v997_v2  ;;  %v2006_v17 = vpop.f32.mrb[16].mxu1 }
 0x10a   :  { %v473_v12 = vpop.f32.mrb[17].mxu0  ;;  %v2008_v20 = vpop.f32.mrb[17].mxu1  ;;  %v1071_v30 = vmul.f32 %v1652_v8, %v1652_v8 }
 0x10b   :  { %v999_v13 = vadd.f32 %v998_v10, %v473_v12  ;;  %v1069_v14 = vmul.f32 %v473_v12, %v473_v12  ;;  %v1131_v15 = vadd.f32 %v1130_v7, %v1068_v6  ;;  %v1653_v16 = vpop.f32.mrb[18].mxu0  ;;  %v2010_v26 = vpop.f32.mrb[18].mxu1 }
 0x10c   :  { %v1444_v18 = vpack.c.bf16 %v1653_v16, %v1652_v8  ;;  %v476_v19 = vpop.f32.mrb[19].mxu0  ;;  %v1524_v27 = vpack.c.bf16 %v2010_v26, %v2006_v17  ;;  %v2017_v29 = vpop.f32.mrb[19].mxu1  ;;  %v1072_v36 = vmul.f32 %v1653_v16, %v1653_v16 }
 0x10d   :  { %v1132_v21 = vadd.f32 %v1131_v15, %v1069_v14  ;;  %v1439_v22 = vpack.c.bf16 %v476_v19, %v473_v12  ;;  %v1000_v23 = vadd.f32 %v999_v13, %v476_v19  ;;  %v1070_v24 = vmul.f32 %v476_v19, %v476_v19 }
 0x10e   :  { %1564 = vst [vmem:[%s2203_s2 + $0x48] sm:$0xff] %v1444_v18   ;;  %v1519_v34 = vpack.c.bf16 %v2017_v29, %v2008_v20  ;;  %1580 = vst [vmem:[%s2203_s2 + $0xc8] sm:$0xff] %v1524_v27  }
 0x10f   :  { %1563 = vst [vmem:[%s2203_s2 + $0x40] sm:$0xff] %v1439_v22   ;;  %v1001_v31 = vadd.f32 %v1652_v8, %v1000_v23  ;;  %v1133_v32 = vadd.f32 %v1132_v21, %v1070_v24 }
 0x110   :  { %1579 = vst [vmem:[%s2203_s2 + $0xc0] sm:$0xff] %v1519_v34  }
 0x111   :  { %v1134_v37 = vadd.f32 %v1133_v32, %v1071_v30  ;;  %v1656_v38 = vpop.f32.mrb[20].mxu0  ;;  %v1002_v39 = vadd.f32 %v1653_v16, %v1001_v31  ;;  %v2030_v47 = vpop.f32.mrb[20].mxu1 }
 0x112   :  { %v489_v40 = vpop.f32.mrb[21].mxu0  ;;  %v2032_v52 = vpop.f32.mrb[21].mxu1  ;;  %v1075_v0 = vmul.f32 %v1656_v38, %v1656_v38 }
 0x113   :  { %v1003_v42 = vadd.f32 %v1002_v39, %v489_v40  ;;  %v1073_v43 = vmul.f32 %v489_v40, %v489_v40  ;;  %v1135_v45 = vadd.f32 %v1134_v37, %v1072_v36  ;;  %v1657_v46 = vpop.f32.mrb[22].mxu0  ;;  %v2034_v59 = vpop.f32.mrb[22].mxu1 }
 0x114   :  { %v1454_v48 = vpack.c.bf16 %v1657_v46, %v1656_v38  ;;  %v492_v50 = vpop.f32.mrb[23].mxu0  ;;  %v1534_v60 = vpack.c.bf16 %v2034_v59, %v2030_v47  ;;  %v2041_v62 = vpop.f32.mrb[23].mxu1  ;;  %v1076_v6 = vmul.f32 %v1657_v46, %v1657_v46 }
 0x115   :  { %v1136_v54 = vadd.f32 %v1135_v45, %v1073_v43  ;;  %v1449_v55 = vpack.c.bf16 %v492_v50, %v489_v40  ;;  %v1004_v57 = vadd.f32 %v1003_v42, %v492_v50  ;;  %v1074_v58 = vmul.f32 %v492_v50, %v492_v50 }
 0x116   :  { %1566 = vst [vmem:[%s2203_s2 + $0x58] sm:$0xff] %v1454_v48   ;;  %v1529_v5 = vpack.c.bf16 %v2041_v62, %v2032_v52  ;;  %1582 = vst [vmem:[%s2203_s2 + $0xd8] sm:$0xff] %v1534_v60  }
 0x117   :  { %1565 = vst [vmem:[%s2203_s2 + $0x50] sm:$0xff] %v1449_v55   ;;  %v1005_v2 = vadd.f32 %v1656_v38, %v1004_v57  ;;  %v1137_v3 = vadd.f32 %v1136_v54, %v1074_v58 }
 0x118   :  { %1581 = vst [vmem:[%s2203_s2 + $0xd0] sm:$0xff] %v1529_v5  }
 0x119   :  { %v1138_v7 = vadd.f32 %v1137_v3, %v1075_v0  ;;  %v1660_v8 = vpop.f32.mrb[24].mxu0  ;;  %v1006_v10 = vadd.f32 %v1657_v46, %v1005_v2  ;;  %v2054_v18 = vpop.f32.mrb[24].mxu1 }
 0x11a   :  { %v505_v12 = vpop.f32.mrb[25].mxu0  ;;  %v2056_v22 = vpop.f32.mrb[25].mxu1  ;;  %v1079_v36 = vmul.f32 %v1660_v8, %v1660_v8 }
 0x11b   :  { %v1007_v13 = vadd.f32 %v1006_v10, %v505_v12  ;;  %v1077_v14 = vmul.f32 %v505_v12, %v505_v12  ;;  %v1139_v15 = vadd.f32 %v1138_v7, %v1076_v6  ;;  %v1661_v16 = vpop.f32.mrb[26].mxu0  ;;  %v2058_v31 = vpop.f32.mrb[26].mxu1 }
 0x11c   :  { %v1464_v19 = vpack.c.bf16 %v1661_v16, %v1660_v8  ;;  %v508_v21 = vpop.f32.mrb[27].mxu0  ;;  %v1544_v32 = vpack.c.bf16 %v2058_v31, %v2054_v18  ;;  %v2065_v34 = vpop.f32.mrb[27].mxu1  ;;  %v1080_v40 = vmul.f32 %v1661_v16, %v1661_v16 }
 0x11d   :  { %v1140_v23 = vadd.f32 %v1139_v15, %v1077_v14  ;;  %v1459_v24 = vpack.c.bf16 %v508_v21, %v505_v12  ;;  %v1008_v27 = vadd.f32 %v1007_v13, %v508_v21  ;;  %v1078_v30 = vmul.f32 %v508_v21, %v508_v21 }
 0x11e   :  { %1568 = vst [vmem:[%s2203_s2 + $0x68] sm:$0xff] %v1464_v19   ;;  %v1539_v39 = vpack.c.bf16 %v2065_v34, %v2056_v22  ;;  %1584 = vst [vmem:[%s2203_s2 + $0xe8] sm:$0xff] %v1544_v32  }
 0x11f   :  { %1567 = vst [vmem:[%s2203_s2 + $0x60] sm:$0xff] %v1459_v24   ;;  %v1009_v37 = vadd.f32 %v1660_v8, %v1008_v27  ;;  %v1141_v38 = vadd.f32 %v1140_v23, %v1078_v30  ;;  %v1085_v23 = vmul.f32 %v1912_v44, %v1912_v44 }
 0x120   :  { %1583 = vst [vmem:[%s2203_s2 + $0xe0] sm:$0xff] %v1539_v39  }
 0x121   :  { %v1142_v42 = vadd.f32 %v1141_v38, %v1079_v36  ;;  %v1664_v43 = vpop.f32.mrb[28].mxu0  ;;  %v1010_v45 = vadd.f32 %v1661_v16, %v1009_v37  ;;  %v2078_v57 = vpop.f32.mrb[28].mxu1  ;;  %v1086_v36 = vmul.f32 %v1921_v51, %v1921_v51  ;;  %v1087_v37 = vmul.f32 %v1910_v41, %v1910_v41 }
 0x122   :  { %v521_v46 = vpop.f32.mrb[29].mxu0  ;;  %v2080_v0 = vpop.f32.mrb[29].mxu1  ;;  %v1083_v12 = vmul.f32 %v1664_v43, %v1664_v43 }
 0x123   :  { %v1011_v48 = vadd.f32 %v1010_v45, %v521_v46  ;;  %v1081_v50 = vmul.f32 %v521_v46, %v521_v46  ;;  %v1143_v54 = vadd.f32 %v1142_v42, %v1080_v40  ;;  %v1665_v55 = vpop.f32.mrb[30].mxu0  ;;  %v2082_v7 = vpop.f32.mrb[30].mxu1  ;;  %v1088_v40 = vmul.f32 %v1914_v49, %v1914_v49 }
 0x124   :  { %v1474_v58 = vpack.c.bf16 %v1665_v55, %v1664_v43  ;;  %v524_v60 = vpop.f32.mrb[31].mxu0  ;;  %v1554_v8 = vpack.c.bf16 %v2082_v7, %v2078_v57  ;;  %v2089_v10 = vpop.f32.mrb[31].mxu1  ;;  %v1084_v16 = vmul.f32 %v1665_v55, %v1665_v55 }
 0x125   :  { %v1144_v2 = vadd.f32 %v1143_v54, %v1081_v50  ;;  %v1469_v3 = vpack.c.bf16 %v524_v60, %v521_v46  ;;  %v1012_v5 = vadd.f32 %v1011_v48, %v524_v60  ;;  %v1082_v6 = vmul.f32 %v524_v60, %v524_v60 }
 0x126   :  { %1570 = vst [vmem:[%s2203_s2 + $0x78] sm:$0xff] %v1474_v58   ;;  %v1549_v15 = vpack.c.bf16 %v2089_v10, %v2080_v0  ;;  %1586 = vst [vmem:[%s2203_s2 + $0xf8] sm:$0xff] %v1554_v8   ;;  %v1090_v50 = vmul.f32 %v1945_v11, %v1945_v11 }
 0x127   :  { %1569 = vst [vmem:[%s2203_s2 + $0x70] sm:$0xff] %v1469_v3   ;;  %v1013_v13 = vadd.f32 %v1664_v43, %v1012_v5  ;;  %v1145_v14 = vadd.f32 %v1144_v2, %v1082_v6  ;;  %v1094_v6 = vmul.f32 %v1969_v35, %v1969_v35 }
 0x128   :  { %1585 = vst [vmem:[%s2203_s2 + $0xf0] sm:$0xff] %v1549_v15  }
 0x129   :  { %v1146_v19 = vadd.f32 %v1145_v14, %v1083_v12  ;;  %v1014_v21 = vadd.f32 %v1665_v55, %v1013_v13 }
 0x12b   :  { %v1015_v24 = vadd.f32 %v1014_v21, %v1912_v44  ;;  %v1147_v27 = vadd.f32 %v1146_v19, %v1084_v16  ;;  %v1089_v44 = vmul.f32 %v1936_v4, %v1936_v4  ;;  %v1098_v21 = vmul.f32 %v1993_v63, %v1993_v63 }
 0x12d   :  { %v1148_v30 = vadd.f32 %v1147_v27, %v1085_v23  ;;  %v1016_v32 = vadd.f32 %v1015_v24, %v1921_v51 }
 0x12f   :  { %v1017_v38 = vadd.f32 %v1910_v41, %v1016_v32  ;;  %v1149_v39 = vadd.f32 %v1148_v30, %v1086_v36  ;;  %v1091_v41 = vmul.f32 %v1934_v1, %v1934_v1 }
 0x131   :  { %v1150_v42 = vadd.f32 %v1149_v39, %v1087_v37  ;;  %v1018_v43 = vadd.f32 %v1914_v49, %v1017_v38  ;;  %v1092_v49 = vmul.f32 %v1938_v9, %v1938_v9  ;;  %v1102_v38 = vmul.f32 %v2017_v29, %v2017_v29 }
 0x133   :  { %v1019_v45 = vadd.f32 %v1018_v43, %v1936_v4  ;;  %v1151_v46 = vadd.f32 %v1150_v42, %v1088_v40  ;;  %v1093_v4 = vmul.f32 %v1960_v28, %v1960_v28 }
 0x135   :  { %v1152_v48 = vadd.f32 %v1151_v46, %v1089_v44  ;;  %v1020_v51 = vadd.f32 %v1019_v45, %v1945_v11 }
 0x137   :  { %v1021_v54 = vadd.f32 %v1934_v1, %v1020_v51  ;;  %v1153_v55 = vadd.f32 %v1152_v48, %v1090_v50  ;;  %v1095_v1 = vmul.f32 %v1958_v25, %v1958_v25  ;;  %v1106_v48 = vmul.f32 %v2041_v62, %v2041_v62 }
 0x139   :  { %v1154_v58 = vadd.f32 %v1153_v55, %v1091_v41  ;;  %v1022_v60 = vadd.f32 %v1938_v9, %v1021_v54  ;;  %v1096_v9 = vmul.f32 %v1962_v33, %v1962_v33 }
 0x13b   :  { %v1023_v2 = vadd.f32 %v1022_v60, %v1960_v28  ;;  %v1155_v3 = vadd.f32 %v1154_v58, %v1092_v49  ;;  %v1097_v28 = vmul.f32 %v1984_v56, %v1984_v56  ;;  %v1110_v60 = vmul.f32 %v2065_v34, %v2065_v34 }
 0x13d   :  { %v1156_v5 = vadd.f32 %v1155_v3, %v1093_v4  ;;  %v1024_v11 = vadd.f32 %v1023_v2, %v1969_v35 }
 0x13f   :  { %v1025_v8 = vadd.f32 %v1958_v25, %v1024_v11  ;;  %v1157_v12 = vadd.f32 %v1156_v5, %v1094_v6  ;;  %v1099_v25 = vmul.f32 %v1982_v53, %v1982_v53 }
 0x141   :  { %v1158_v13 = vadd.f32 %v1157_v12, %v1095_v1  ;;  %v1026_v14 = vadd.f32 %v1962_v33, %v1025_v8  ;;  %v1100_v33 = vmul.f32 %v1986_v61, %v1986_v61  ;;  %v1114_v8 = vmul.f32 %v2089_v10, %v2089_v10 }
 0x143   :  { %v1027_v15 = vadd.f32 %v1026_v14, %v1984_v56  ;;  %v1159_v16 = vadd.f32 %v1158_v13, %v1096_v9  ;;  %v1101_v56 = vmul.f32 %v2008_v20, %v2008_v20 }
 0x145   :  { %v1160_v19 = vadd.f32 %v1159_v16, %v1097_v28  ;;  %v1028_v35 = vadd.f32 %v1027_v15, %v1993_v63 }
 0x147   :  { %v1029_v23 = vadd.f32 %v1982_v53, %v1028_v35  ;;  %v1161_v24 = vadd.f32 %v1160_v19, %v1098_v21  ;;  %v1103_v53 = vmul.f32 %v2006_v17, %v2006_v17 }
 0x149   :  { %v1162_v27 = vadd.f32 %v1161_v24, %v1099_v25  ;;  %v1030_v30 = vadd.f32 %v1986_v61, %v1029_v23  ;;  %v1104_v61 = vmul.f32 %v2010_v26, %v2010_v26 }
 0x14b   :  { %v1031_v32 = vadd.f32 %v1030_v30, %v2008_v20  ;;  %v1163_v36 = vadd.f32 %v1162_v27, %v1100_v33  ;;  %v1105_v20 = vmul.f32 %v2032_v52, %v2032_v52 }
 0x14d   :  { %v1164_v37 = vadd.f32 %v1163_v36, %v1101_v56  ;;  %v1032_v63 = vadd.f32 %v1031_v32, %v2017_v29 }
 0x14f   :  { %v1033_v39 = vadd.f32 %v2006_v17, %v1032_v63  ;;  %v1165_v40 = vadd.f32 %v1164_v37, %v1102_v38  ;;  %v1107_v17 = vmul.f32 %v2030_v47, %v2030_v47 }
 0x151   :  { %v1166_v42 = vadd.f32 %v1165_v40, %v1103_v53  ;;  %v1034_v43 = vadd.f32 %v2010_v26, %v1033_v39  ;;  %v1108_v26 = vmul.f32 %v2034_v59, %v2034_v59 }
 0x153   :  { %v1035_v44 = vadd.f32 %v1034_v43, %v2032_v52  ;;  %v1167_v45 = vadd.f32 %v1166_v42, %v1104_v61  ;;  %v1109_v52 = vmul.f32 %v2056_v22, %v2056_v22 }
 0x155   :  { %v1168_v46 = vadd.f32 %v1167_v45, %v1105_v20  ;;  %v1036_v29 = vadd.f32 %v1035_v44, %v2041_v62 }
 0x157   :  { %v1037_v51 = vadd.f32 %v2030_v47, %v1036_v29  ;;  %v1169_v50 = vadd.f32 %v1168_v46, %v1106_v48  ;;  %v1111_v47 = vmul.f32 %v2054_v18, %v2054_v18 }
 0x159   :  { %v1170_v41 = vadd.f32 %v1169_v50, %v1107_v17  ;;  %v1038_v54 = vadd.f32 %v2034_v59, %v1037_v51  ;;  %v1112_v59 = vmul.f32 %v2058_v31, %v2058_v31 }
 0x15b   :  { %v1039_v55 = vadd.f32 %v1038_v54, %v2056_v22  ;;  %v1171_v49 = vadd.f32 %v1170_v41, %v1108_v26  ;;  %v1113_v22 = vmul.f32 %v2080_v0, %v2080_v0 }
 0x15d   :  { %v1172_v58 = vadd.f32 %v1171_v49, %v1109_v52  ;;  %v1040_v62 = vadd.f32 %v1039_v55, %v2065_v34 }
 0x15f   :  { %v1041_v4 = vadd.f32 %v2054_v18, %v1040_v62  ;;  %v1173_v2 = vadd.f32 %v1172_v58, %v1110_v60  ;;  %v1115_v18 = vmul.f32 %v2078_v57, %v2078_v57 }
 0x161   :  { %v1174_v3 = vadd.f32 %v1173_v2, %v1111_v47  ;;  %v1042_v5 = vadd.f32 %v2058_v31, %v1041_v4  ;;  %v1116_v31 = vmul.f32 %v2082_v7, %v2082_v7 }
 0x163   :  { %v1043_v11 = vadd.f32 %v1042_v5, %v2080_v0  ;;  %v1175_v6 = vadd.f32 %v1174_v3, %v1112_v59 }
 0x165   :  { %v1176_v1 = vadd.f32 %v1175_v6, %v1113_v22  ;;  %v1044_v34 = vadd.f32 %v1043_v11, %v2089_v10 }
 0x167   :  { %v1045_v12 = vadd.f32 %v2078_v57, %v1044_v34  ;;  %v1177_v9 = vadd.f32 %v1176_v1, %v1114_v8 }
 0x169   :  { %v1046_v13 = vadd.f32 %v2082_v7, %v1045_v12  ;;  %v1178_v14 = vadd.f32 %v1177_v9, %v1115_v18 }
 0x16b   :  { %v1047_v0 = vrot.slane %v1046_v13, 4  ;;  %v1179_v28 = vadd.f32 %v1178_v14, %v1116_v31 }
 0x16d   :  { %v1048_v15 = vadd.f32 %v1047_v0, %v1046_v13  ;;  %v1180_v16 = vrot.slane %v1179_v28, 4 }
 0x16f   :  { %v1049_v19 = vrot.slane %v1048_v15, 2  ;;  %v1181_v35 = vadd.f32 %v1180_v16, %v1179_v28 }
 0x171   :  { %v1050_v21 = vadd.f32 %v1049_v19, %v1048_v15  ;;  %v1182_v10 = vrot.slane %v1181_v35, 2 }
 0x173   :  { %v1051_v25 = vrot.slane %v1050_v21, 1  ;;  %v1183_v23 = vadd.f32 %v1182_v10, %v1181_v35 }
 0x175   :  { %v1184_v24 = vrot.slane %v1183_v23, 1  ;;  %v1052_v57 = vadd.f32 %v1051_v25, %v1050_v21 }
 0x177   :  { %v1185_v33 = vadd.f32 %v1184_v24, %v1183_v23 }
 0x179   :  { %v1187_v27 = vsel %vm1186_vm2, %v1052_v57, %v1185_v33 }
 0x17a   :  { %v1189_v30 = vsel %vm1188_vm3, %v1187_v27, 0.0 }
 0x17b   :  { %1190 = vst [vmem:[%s2204_s3] sm:$0xff] %v1189_v30 }

</bundles_post_ra>
